<compile_context>
chip_gen: v7x
topology: tpu7x:2x2x1
jax: 0.10.0
libtpu: 0.0.40
codegen_flags: <defaults>
</compile_context>

<pallas_src>
import functools

import jax
import jax.numpy as jnp
from jax.experimental import pallas as pl
from jax.experimental.pallas import tpu as pltpu

LANE = 128      # all feature dims padded to the 128-lane vreg width
TILE_M = 256    # dst rows per grid step (fills the 256x256 MXU on v6e/v7x)
TILE_S = 512    # src rows per reduction step (A tile = 256x512 bf16 = 256 KiB)


def _round_up(n, m):
    return ((n + m - 1) // m) * m


def _pad_nodes(n):
    """Pad a node-level count so it works both as a dst (sublane) extent and a
    src (lane) extent and divides evenly into the chosen tiles."""
    p = _round_up(n, LANE)
    if p > TILE_M:
        p = _round_up(p, TILE_M)
    if p > TILE_S:
        p = _round_up(p, TILE_S)
    return p


def _pad2d(x, rows, cols, dtype):
    out = jnp.zeros((rows, cols), dtype)
    return out.at[: x.shape[0], : x.shape[1]].set(x.astype(dtype))


# --------------------------------------------------------------------------
# Per-layer SAGEConv kernel: grid = (dst tiles, src reduction tiles)
# --------------------------------------------------------------------------
def sage_layer_kernel(a_ref, hsrc_ref, hdst_ref, ws_ref, wn_ref, b_ref,
                      o_ref, acc_ref, *, apply_relu):
    s = pl.program_id(1)

    @pl.when(s == 0)
    def _():
        acc_ref[...] = jnp.zeros_like(acc_ref)

    # mean aggregation over sampled in-neighbours (A is row-normalized);
    # partial sums accumulated in f32 VMEM across the src reduction axis.
    acc_ref[...] += jnp.dot(a_ref[...], hsrc_ref[...],
                            preferred_element_type=jnp.float32)

    @pl.when(s == pl.num_programs(1) - 1)
    def _():
        # two K=128 MXU dots (no concatenate / agg relayout), f32 accumulate
        out = jnp.dot(hdst_ref[...], ws_ref[...],
                      preferred_element_type=jnp.float32)
        out += jnp.dot(acc_ref[...].astype(jnp.bfloat16), wn_ref[...],
                       preferred_element_type=jnp.float32)
        out += b_ref[...]                       # bias in f32
        if apply_relu:                          # middle layers only
            out = jnp.maximum(out, 0.0)
        o_ref[...] = out.astype(o_ref.dtype)


def sage_layer(a_p, h_p, w_self_p, w_neigh_p, b_p, *, apply_relu, out_dtype):
    p_dst, p_src = a_p.shape
    assert h_p.shape == (p_src, LANE)
    tm = min(TILE_M, p_dst)
    ts = min(TILE_S, p_src)
    grid = (p_dst // tm, p_src // ts)

    flops = 2 * p_dst * p_src * LANE + 2 * (2 * p_dst * LANE * LANE)
    bytes_accessed = (
        a_p.size * a_p.dtype.itemsize                     # adjacency stream
        + p_src * LANE * 2 + p_dst * LANE * 2              # h_src + h_dst (bf16)
        + 2 * LANE * LANE * 2 + LANE * 4                   # W_self, W_neigh, b
        + p_dst * LANE * jnp.dtype(out_dtype).itemsize)    # output

    kernel = functools.partial(sage_layer_kernel, apply_relu=apply_relu)
    return pl.pallas_call(
        kernel,
        out_shape=jax.ShapeDtypeStruct((p_dst, LANE), out_dtype),
        grid_spec=pltpu.PrefetchScalarGridSpec(
            num_scalar_prefetch=0,
            grid=grid,
            in_specs=[
                pl.BlockSpec((tm, ts), lambda m, s: (m, s)),       # A tile (streamed)
                pl.BlockSpec((ts, LANE), lambda m, s: (s, 0)),     # h_src tile (streamed)
                pl.BlockSpec((tm, LANE), lambda m, s: (m, 0)),     # h_dst tile
                pl.BlockSpec((LANE, LANE), lambda m, s: (0, 0)),   # W_self (resident)
                pl.BlockSpec((LANE, LANE), lambda m, s: (0, 0)),   # W_neigh (resident)
                pl.BlockSpec((1, LANE), lambda m, s: (0, 0)),      # bias (resident)
            ],
            out_specs=pl.BlockSpec((tm, LANE), lambda m, s: (m, 0)),
            scratch_shapes=[pltpu.VMEM((tm, LANE), jnp.float32)],
        ),
        compiler_params=pltpu.CompilerParams(
            dimension_semantics=("parallel", "arbitrary"),   # dst blocks -> 2 TCs on v7x
            vmem_limit_bytes=32 * 1024 * 1024),
        cost_estimate=pl.CostEstimate(flops=flops, transcendentals=0,
                                      bytes_accessed=bytes_accessed),
    )(a_p, h_p, h_p, w_self_p, w_neigh_p, b_p)


# --------------------------------------------------------------------------
# Model.forward on pre-padded bf16 inputs (hot path; jit-able)
# --------------------------------------------------------------------------
def model_forward(adjs_p, x_p, params_p):
    n_layers = len(params_p)
    h = x_p
    for i, (a_p, (ws_p, wn_p, b_p)) in enumerate(zip(adjs_p, params_p)):
        apply_relu = 0 < i < n_layers - 1           # middle layers only
        out_dtype = jnp.float32 if i == n_layers - 1 else jnp.bfloat16
        h = sage_layer(a_p, h, ws_p, wn_p, b_p,
                       apply_relu=apply_relu, out_dtype=out_dtype)
        # TODO(synk): dropout after activation omitted (eval mode identity).
    return h


def prepare_inputs(adjs, x, params):
    """One-time host-side padding + bf16 cast (sampler-side / outside the
    jitted forward path, per perf review)."""
    n_layers = len(params)
    levels = [adjs[0].shape[1]] + [a.shape[0] for a in adjs]   # src_0, dst_0.., dst_last
    p_levels = [_pad_nodes(n) for n in levels]
    x_p = _pad2d(x, p_levels[0], LANE, jnp.bfloat16)
    adjs_p = [_pad2d(adjs[i], p_levels[i + 1], p_levels[i], jnp.bfloat16)
              for i in range(n_layers)]
    params_p = []
    for (w_neigh, w_self, b) in params:
        params_p.append((
            _pad2d(w_self, LANE, LANE, jnp.bfloat16),
            _pad2d(w_neigh, LANE, LANE, jnp.bfloat16),
            _pad2d(b.reshape(1, -1), 1, LANE, jnp.float32),
        ))
    return adjs_p, x_p, params_p


# --------------------------------------------------------------------------
# Pure-JAX f32 reference + toy data
# --------------------------------------------------------------------------
def _reference_forward(adjs, x, params, n_layers):
    h = x
    for i, (a, (w_neigh, w_self, b)) in enumerate(zip(adjs, params)):
        d = a.shape[0]
        out = h[:d] @ w_self + (a @ h) @ w_neigh + b
        if 0 < i < n_layers - 1:
            out = jnp.maximum(out, 0.0)
        h = out
    return h


def _make_block_adj(key, num_dst, num_src, p=0.3):
    """Dense row-normalized adjacency of a sampled MFG block."""
    mask = jax.random.bernoulli(key, p, (num_dst, num_src)).astype(jnp.float32)
    eye = jnp.zeros((num_dst, num_src)).at[jnp.arange(num_dst),
                                           jnp.arange(num_dst)].set(1.0)
    mask = jnp.maximum(mask, eye)              # keep no dst node isolated
    deg = jnp.maximum(mask.sum(axis=1, keepdims=True), 1.0)
    return mask / deg


def _init_sage_params(key, in_feats, out_feats):
    k1, k2 = jax.random.split(key)
    scale = 1.0 / jnp.sqrt(jnp.float32(in_feats))
    w_neigh = jax.random.normal(k1, (in_feats, out_feats), jnp.float32) * scale
    w_self = jax.random.normal(k2, (in_feats, out_feats), jnp.float32) * scale
    bias = jnp.zeros((out_feats,), jnp.float32)
    return w_neigh, w_self, bias


if __name__ == "__main__":
    # Small config consistent with the module's constructor.
    in_feats, n_hidden, n_classes, n_layers = 32, 32, 8, 3
    # MFG fanout: dst nodes of layer i become src nodes of layer i+1.
    num_nodes = [64, 32, 16, 8]          # src_0, dst_0=src_1, dst_1=src_2, dst_2

    root = jax.random.PRNGKey(0)
    k_feat, k_adj, k_par = jax.random.split(root, 3)

    x = jax.random.normal(k_feat, (num_nodes[0], in_feats), jnp.float32)

    adj_keys = jax.random.split(k_adj, n_layers)
    adjs = [_make_block_adj(adj_keys[i], num_nodes[i + 1], num_nodes[i])
            for i in range(n_layers)]

    layer_dims = [(in_feats, n_hidden)] + \
                 [(n_hidden, n_hidden)] * (n_layers - 2) + \
                 [(n_hidden, n_classes)]
    par_keys = jax.random.split(k_par, n_layers)
    params = [_init_sage_params(par_keys[i], *layer_dims[i])
              for i in range(n_layers)]

    # one-time prep (padding + bf16 cast) outside the jitted forward hot path
    adjs_p, x_p, params_p = prepare_inputs(adjs, x, params)

    fwd = jax.jit(model_forward)
    out_p = jax.block_until_ready(fwd(adjs_p, x_p, params_p))
    out = out_p[:num_nodes[-1], :n_classes]       # slice off node + lane padding

    assert out.shape == (num_nodes[-1], n_classes), out.shape
    assert jnp.isfinite(out).all()

    # sanity check against the pure-JAX f32 reference (bf16-tolerant)
    ref = jax.block_until_ready(_reference_forward(adjs, x, params, n_layers))
    max_err = float(jnp.max(jnp.abs(out - ref)))
    assert max_err < 0.25, f"kernel/reference mismatch, max abs err={max_err}"

    print("KERNEL_OK")
</pallas_src>

<mosaic_0001>
module attributes {stable_mosaic.version = 11 : i64} {
  func.func @sage_layer_kernel(%arg0: i32, %arg1: i32, %arg2: memref<128x128xbf16, #tpu.memory_space<vmem>>, %arg3: memref<128x128xbf16, #tpu.memory_space<vmem>>, %arg4: memref<128x128xbf16, #tpu.memory_space<vmem>>, %arg5: memref<128x128xbf16, #tpu.memory_space<vmem>>, %arg6: memref<128x128xbf16, #tpu.memory_space<vmem>>, %arg7: memref<1x128xf32, #tpu.memory_space<vmem>>, %arg8: memref<128x128xf32, #tpu.memory_space<vmem>>, %arg9: memref<128x128xf32, #tpu.memory_space<vmem>>) attributes {dimension_semantics = [#tpu.dimension_semantics<parallel>, #tpu.dimension_semantics<arbitrary>], iteration_bounds = array<i64: 1, 1>, scalar_prefetch = 0 : i64, scratch_operands = 1 : i64, tpu.core_type = #tpu.core_type<tc>, window_params = [{transform_indices = @transform_0, window_bounds = array<i64: 128, 128>}, {transform_indices = @transform_1, window_bounds = array<i64: 128, 128>}, {transform_indices = @transform_2, window_bounds = array<i64: 128, 128>}, {pipeline_mode = #tpu.pipeline_mode<synchronous>, transform_indices = @transform_3, window_bounds = array<i64: 128, 128>}, {pipeline_mode = #tpu.pipeline_mode<synchronous>, transform_indices = @transform_4, window_bounds = array<i64: 128, 128>}, {pipeline_mode = #tpu.pipeline_mode<synchronous>, transform_indices = @transform_5, window_bounds = array<i64: 1, 128>}, {transform_indices = @transform_6, window_bounds = array<i64: 128, 128>}]} {
    %c0_i32 = arith.constant 0 : i32
    %0 = arith.cmpi eq, %arg1, %c0_i32 : i32
    %1 = arith.extui %0 : i1 to i32
    %c0_i32_0 = arith.constant 0 : i32
    %2 = arith.cmpi ne, %1, %c0_i32_0 : i32
    scf.if %2 {
      %cst_10 = arith.constant 0.000000e+00 : f32
      %12 = vector.broadcast %cst_10 : f32 to vector<128x128xf32>
      %c0_11 = arith.constant 0 : index
      %c0_12 = arith.constant 0 : index
      %13 = vector.load %arg9[%c0_11, %c0_12] : memref<128x128xf32, #tpu.memory_space<vmem>>, vector<128x128xf32>
      tpu.vector_store %arg9[%c0_11, %c0_12], %12 {strides = array<i32>} : memref<128x128xf32, #tpu.memory_space<vmem>>, vector<128x128xf32>,
    } else {
    }
    %c0 = arith.constant 0 : index
    %c0_1 = arith.constant 0 : index
    %3 = vector.load %arg9[%c0, %c0_1] : memref<128x128xf32, #tpu.memory_space<vmem>>, vector<128x128xf32>
    %c0_2 = arith.constant 0 : index
    %c0_3 = arith.constant 0 : index
    %4 = vector.load %arg2[%c0_2, %c0_3] : memref<128x128xbf16, #tpu.memory_space<vmem>>, vector<128x128xbf16>
    %c0_4 = arith.constant 0 : index
    %c0_5 = arith.constant 0 : index
    %5 = vector.load %arg3[%c0_4, %c0_5] : memref<128x128xbf16, #tpu.memory_space<vmem>>, vector<128x128xbf16>
    %cst = arith.constant dense<0.000000e+00> : vector<128x128xf32>
    %6 = tpu.matmul %4, %5, %cst {dimension_numbers = #tpu.dot_dimension_numbers<[1], [0], [0], [1], [0, 0, 1, 1], [], []>} : vector<128x128xbf16>, vector<128x128xbf16>, vector<128x128xf32> -> vector<128x128xf32>
    %7 = arith.addf %3, %6 : vector<128x128xf32>
    %c0_6 = arith.constant 0 : index
    %c0_7 = arith.constant 0 : index
    %8 = vector.load %arg9[%c0_6, %c0_7] : memref<128x128xf32, #tpu.memory_space<vmem>>, vector<128x128xf32>
    tpu.vector_store %arg9[%c0_6, %c0_7], %7 {strides = array<i32>} : memref<128x128xf32, #tpu.memory_space<vmem>>, vector<128x128xf32>,
    %c0_i32_8 = arith.constant 0 : i32
    %9 = arith.cmpi eq, %arg1, %c0_i32_8 : i32
    %10 = arith.extui %9 : i1 to i32
    %c0_i32_9 = arith.constant 0 : i32
    %11 = arith.cmpi ne, %10, %c0_i32_9 : i32
    scf.if %11 {
      %c0_10 = arith.constant 0 : index
      %c0_11 = arith.constant 0 : index
      %12 = vector.load %arg4[%c0_10, %c0_11] : memref<128x128xbf16, #tpu.memory_space<vmem>>, vector<128x128xbf16>
      %c0_12 = arith.constant 0 : index
      %c0_13 = arith.constant 0 : index
      %13 = vector.load %arg5[%c0_12, %c0_13] : memref<128x128xbf16, #tpu.memory_space<vmem>>, vector<128x128xbf16>
      %cst_14 = arith.constant dense<0.000000e+00> : vector<128x128xf32>
      %14 = tpu.matmul %12, %13, %cst_14 {dimension_numbers = #tpu.dot_dimension_numbers<[1], [0], [0], [1], [0, 0, 1, 1], [], []>} : vector<128x128xbf16>, vector<128x128xbf16>, vector<128x128xf32> -> vector<128x128xf32>
      %c0_15 = arith.constant 0 : index
      %c0_16 = arith.constant 0 : index
      %15 = vector.load %arg9[%c0_15, %c0_16] : memref<128x128xf32, #tpu.memory_space<vmem>>, vector<128x128xf32>
      %16 = arith.truncf %15 : vector<128x128xf32> to vector<128x128xbf16>
      %c0_17 = arith.constant 0 : index
      %c0_18 = arith.constant 0 : index
      %17 = vector.load %arg6[%c0_17, %c0_18] : memref<128x128xbf16, #tpu.memory_space<vmem>>, vector<128x128xbf16>
      %cst_19 = arith.constant dense<0.000000e+00> : vector<128x128xf32>
      %18 = tpu.matmul %16, %17, %cst_19 {dimension_numbers = #tpu.dot_dimension_numbers<[1], [0], [0], [1], [0, 0, 1, 1], [], []>} : vector<128x128xbf16>, vector<128x128xbf16>, vector<128x128xf32> -> vector<128x128xf32>
      %19 = arith.addf %14, %18 : vector<128x128xf32>
      %c0_20 = arith.constant 0 : index
      %c0_21 = arith.constant 0 : index
      %20 = vector.load %arg7[%c0_20, %c0_21] : memref<1x128xf32, #tpu.memory_space<vmem>>, vector<1x128xf32>
      %21 = vector.broadcast %20 : vector<1x128xf32> to vector<128x128xf32>
      %22 = arith.addf %19, %21 : vector<128x128xf32>
      %c0_22 = arith.constant 0 : index
      %c0_23 = arith.constant 0 : index
      %23 = vector.load %arg8[%c0_22, %c0_23] : memref<128x128xf32, #tpu.memory_space<vmem>>, vector<128x128xf32>
      tpu.vector_store %arg8[%c0_22, %c0_23], %22 {strides = array<i32>} : memref<128x128xf32, #tpu.memory_space<vmem>>, vector<128x128xf32>,
    } else {
    }
    return
  }
  func.func @transform_0(%arg0: i32, %arg1: i32) -> (i32, i32) {
    %c0_i32 = arith.constant 0 : i32
    return %arg0, %arg1 : i32, i32
  }
  func.func @transform_1(%arg0: i32, %arg1: i32) -> (i32, i32) {
    %c0_i32 = arith.constant 0 : i32
    %c0_i32_0 = arith.constant 0 : i32
    return %arg1, %c0_i32 : i32, i32
  }
  func.func @transform_2(%arg0: i32, %arg1: i32) -> (i32, i32) {
    %c0_i32 = arith.constant 0 : i32
    %c0_i32_0 = arith.constant 0 : i32
    return %arg0, %c0_i32 : i32, i32
  }
  func.func @transform_3(%arg0: i32, %arg1: i32) -> (i32, i32) {
    %c0_i32 = arith.constant 0 : i32
    %c0_i32_0 = arith.constant 0 : i32
    %c0_i32_1 = arith.constant 0 : i32
    return %c0_i32, %c0_i32_0 : i32, i32
  }
  func.func @transform_4(%arg0: i32, %arg1: i32) -> (i32, i32) {
    %c0_i32 = arith.constant 0 : i32
    %c0_i32_0 = arith.constant 0 : i32
    %c0_i32_1 = arith.constant 0 : i32
    return %c0_i32, %c0_i32_0 : i32, i32
  }
  func.func @transform_5(%arg0: i32, %arg1: i32) -> (i32, i32) {
    %c0_i32 = arith.constant 0 : i32
    %c0_i32_0 = arith.constant 0 : i32
    %c0_i32_1 = arith.constant 0 : i32
    return %c0_i32, %c0_i32_0 : i32, i32
  }
  func.func @transform_6(%arg0: i32, %arg1: i32) -> (i32, i32) {
    %c0_i32 = arith.constant 0 : i32
    %c0_i32_0 = arith.constant 0 : i32
    return %arg0, %c0_i32 : i32, i32
  }
}

module attributes {stable_mosaic.version = 11 : i64} {
  func.func @sage_layer_kernel(%arg0: i32, %arg1: i32, %arg2: memref<128x128xbf16, #tpu.memory_space<vmem>>, %arg3: memref<128x128xbf16, #tpu.memory_space<vmem>>, %arg4: memref<128x128xbf16, #tpu.memory_space<vmem>>, %arg5: memref<128x128xbf16, #tpu.memory_space<vmem>>, %arg6: memref<128x128xbf16, #tpu.memory_space<vmem>>, %arg7: memref<1x128xf32, #tpu.memory_space<vmem>>, %arg8: memref<128x128xbf16, #tpu.memory_space<vmem>>, %arg9: memref<128x128xf32, #tpu.memory_space<vmem>>) attributes {dimension_semantics = [#tpu.dimension_semantics<parallel>, #tpu.dimension_semantics<arbitrary>], iteration_bounds = array<i64: 1, 1>, scalar_prefetch = 0 : i64, scratch_operands = 1 : i64, tpu.core_type = #tpu.core_type<tc>, window_params = [{transform_indices = @transform_0, window_bounds = array<i64: 128, 128>}, {transform_indices = @transform_1, window_bounds = array<i64: 128, 128>}, {transform_indices = @transform_2, window_bounds = array<i64: 128, 128>}, {pipeline_mode = #tpu.pipeline_mode<synchronous>, transform_indices = @transform_3, window_bounds = array<i64: 128, 128>}, {pipeline_mode = #tpu.pipeline_mode<synchronous>, transform_indices = @transform_4, window_bounds = array<i64: 128, 128>}, {pipeline_mode = #tpu.pipeline_mode<synchronous>, transform_indices = @transform_5, window_bounds = array<i64: 1, 128>}, {transform_indices = @transform_6, window_bounds = array<i64: 128, 128>}]} {
    %c0_i32 = arith.constant 0 : i32
    %0 = arith.cmpi eq, %arg1, %c0_i32 : i32
    %1 = arith.extui %0 : i1 to i32
    %c0_i32_0 = arith.constant 0 : i32
    %2 = arith.cmpi ne, %1, %c0_i32_0 : i32
    scf.if %2 {
      %cst_10 = arith.constant 0.000000e+00 : f32
      %12 = vector.broadcast %cst_10 : f32 to vector<128x128xf32>
      %c0_11 = arith.constant 0 : index
      %c0_12 = arith.constant 0 : index
      %13 = vector.load %arg9[%c0_11, %c0_12] : memref<128x128xf32, #tpu.memory_space<vmem>>, vector<128x128xf32>
      tpu.vector_store %arg9[%c0_11, %c0_12], %12 {strides = array<i32>} : memref<128x128xf32, #tpu.memory_space<vmem>>, vector<128x128xf32>,
    } else {
    }
    %c0 = arith.constant 0 : index
    %c0_1 = arith.constant 0 : index
    %3 = vector.load %arg9[%c0, %c0_1] : memref<128x128xf32, #tpu.memory_space<vmem>>, vector<128x128xf32>
    %c0_2 = arith.constant 0 : index
    %c0_3 = arith.constant 0 : index
    %4 = vector.load %arg2[%c0_2, %c0_3] : memref<128x128xbf16, #tpu.memory_space<vmem>>, vector<128x128xbf16>
    %c0_4 = arith.constant 0 : index
    %c0_5 = arith.constant 0 : index
    %5 = vector.load %arg3[%c0_4, %c0_5] : memref<128x128xbf16, #tpu.memory_space<vmem>>, vector<128x128xbf16>
    %cst = arith.constant dense<0.000000e+00> : vector<128x128xf32>
    %6 = tpu.matmul %4, %5, %cst {dimension_numbers = #tpu.dot_dimension_numbers<[1], [0], [0], [1], [0, 0, 1, 1], [], []>} : vector<128x128xbf16>, vector<128x128xbf16>, vector<128x128xf32> -> vector<128x128xf32>
    %7 = arith.addf %3, %6 : vector<128x128xf32>
    %c0_6 = arith.constant 0 : index
    %c0_7 = arith.constant 0 : index
    %8 = vector.load %arg9[%c0_6, %c0_7] : memref<128x128xf32, #tpu.memory_space<vmem>>, vector<128x128xf32>
    tpu.vector_store %arg9[%c0_6, %c0_7], %7 {strides = array<i32>} : memref<128x128xf32, #tpu.memory_space<vmem>>, vector<128x128xf32>,
    %c0_i32_8 = arith.constant 0 : i32
    %9 = arith.cmpi eq, %arg1, %c0_i32_8 : i32
    %10 = arith.extui %9 : i1 to i32
    %c0_i32_9 = arith.constant 0 : i32
    %11 = arith.cmpi ne, %10, %c0_i32_9 : i32
    scf.if %11 {
      %c0_10 = arith.constant 0 : index
      %c0_11 = arith.constant 0 : index
      %12 = vector.load %arg4[%c0_10, %c0_11] : memref<128x128xbf16, #tpu.memory_space<vmem>>, vector<128x128xbf16>
      %c0_12 = arith.constant 0 : index
      %c0_13 = arith.constant 0 : index
      %13 = vector.load %arg5[%c0_12, %c0_13] : memref<128x128xbf16, #tpu.memory_space<vmem>>, vector<128x128xbf16>
      %cst_14 = arith.constant dense<0.000000e+00> : vector<128x128xf32>
      %14 = tpu.matmul %12, %13, %cst_14 {dimension_numbers = #tpu.dot_dimension_numbers<[1], [0], [0], [1], [0, 0, 1, 1], [], []>} : vector<128x128xbf16>, vector<128x128xbf16>, vector<128x128xf32> -> vector<128x128xf32>
      %c0_15 = arith.constant 0 : index
      %c0_16 = arith.constant 0 : index
      %15 = vector.load %arg9[%c0_15, %c0_16] : memref<128x128xf32, #tpu.memory_space<vmem>>, vector<128x128xf32>
      %16 = arith.truncf %15 : vector<128x128xf32> to vector<128x128xbf16>
      %c0_17 = arith.constant 0 : index
      %c0_18 = arith.constant 0 : index
      %17 = vector.load %arg6[%c0_17, %c0_18] : memref<128x128xbf16, #tpu.memory_space<vmem>>, vector<128x128xbf16>
      %cst_19 = arith.constant dense<0.000000e+00> : vector<128x128xf32>
      %18 = tpu.matmul %16, %17, %cst_19 {dimension_numbers = #tpu.dot_dimension_numbers<[1], [0], [0], [1], [0, 0, 1, 1], [], []>} : vector<128x128xbf16>, vector<128x128xbf16>, vector<128x128xf32> -> vector<128x128xf32>
      %19 = arith.addf %14, %18 : vector<128x128xf32>
      %c0_20 = arith.constant 0 : index
      %c0_21 = arith.constant 0 : index
      %20 = vector.load %arg7[%c0_20, %c0_21] : memref<1x128xf32, #tpu.memory_space<vmem>>, vector<1x128xf32>
      %21 = vector.broadcast %20 : vector<1x128xf32> to vector<128x128xf32>
      %22 = arith.addf %19, %21 : vector<128x128xf32>
      %cst_22 = arith.constant 0.000000e+00 : f32
      %23 = vector.broadcast %cst_22 : f32 to vector<128x128xf32>
      %24 = arith.maximumf %22, %23 : vector<128x128xf32>
      %25 = arith.truncf %24 : vector<128x128xf32> to vector<128x128xbf16>
      %c0_23 = arith.constant 0 : index
      %c0_24 = arith.constant 0 : index
      %26 = vector.load %arg8[%c0_23, %c0_24] : memref<128x128xbf16, #tpu.memory_space<vmem>>, vector<128x128xbf16>
      tpu.vector_store %arg8[%c0_23, %c0_24], %25 {strides = array<i32>} : memref<128x128xbf16, #tpu.memory_space<vmem>>, vector<128x128xbf16>,
    } else {
    }
    return
  }
  func.func @transform_0(%arg0: i32, %arg1: i32) -> (i32, i32) {
    %c0_i32 = arith.constant 0 : i32
    return %arg0, %arg1 : i32, i32
  }
  func.func @transform_1(%arg0: i32, %arg1: i32) -> (i32, i32) {
    %c0_i32 = arith.constant 0 : i32
    %c0_i32_0 = arith.constant 0 : i32
    return %arg1, %c0_i32 : i32, i32
  }
  func.func @transform_2(%arg0: i32, %arg1: i32) -> (i32, i32) {
    %c0_i32 = arith.constant 0 : i32
    %c0_i32_0 = arith.constant 0 : i32
    return %arg0, %c0_i32 : i32, i32
  }
  func.func @transform_3(%arg0: i32, %arg1: i32) -> (i32, i32) {
    %c0_i32 = arith.constant 0 : i32
    %c0_i32_0 = arith.constant 0 : i32
    %c0_i32_1 = arith.constant 0 : i32
    return %c0_i32, %c0_i32_0 : i32, i32
  }
  func.func @transform_4(%arg0: i32, %arg1: i32) -> (i32, i32) {
    %c0_i32 = arith.constant 0 : i32
    %c0_i32_0 = arith.constant 0 : i32
    %c0_i32_1 = arith.constant 0 : i32
    return %c0_i32, %c0_i32_0 : i32, i32
  }
  func.func @transform_5(%arg0: i32, %arg1: i32) -> (i32, i32) {
    %c0_i32 = arith.constant 0 : i32
    %c0_i32_0 = arith.constant 0 : i32
    %c0_i32_1 = arith.constant 0 : i32
    return %c0_i32, %c0_i32_0 : i32, i32
  }
  func.func @transform_6(%arg0: i32, %arg1: i32) -> (i32, i32) {
    %c0_i32 = arith.constant 0 : i32
    %c0_i32_0 = arith.constant 0 : i32
    return %arg0, %c0_i32 : i32, i32
  }
}

module attributes {stable_mosaic.version = 11 : i64} {
  func.func @sage_layer_kernel(%arg0: i32, %arg1: i32, %arg2: memref<128x128xbf16, #tpu.memory_space<vmem>>, %arg3: memref<128x128xbf16, #tpu.memory_space<vmem>>, %arg4: memref<128x128xbf16, #tpu.memory_space<vmem>>, %arg5: memref<128x128xbf16, #tpu.memory_space<vmem>>, %arg6: memref<128x128xbf16, #tpu.memory_space<vmem>>, %arg7: memref<1x128xf32, #tpu.memory_space<vmem>>, %arg8: memref<128x128xbf16, #tpu.memory_space<vmem>>, %arg9: memref<128x128xf32, #tpu.memory_space<vmem>>) attributes {dimension_semantics = [#tpu.dimension_semantics<parallel>, #tpu.dimension_semantics<arbitrary>], iteration_bounds = array<i64: 1, 1>, scalar_prefetch = 0 : i64, scratch_operands = 1 : i64, tpu.core_type = #tpu.core_type<tc>, window_params = [{transform_indices = @transform_0, window_bounds = array<i64: 128, 128>}, {transform_indices = @transform_1, window_bounds = array<i64: 128, 128>}, {transform_indices = @transform_2, window_bounds = array<i64: 128, 128>}, {pipeline_mode = #tpu.pipeline_mode<synchronous>, transform_indices = @transform_3, window_bounds = array<i64: 128, 128>}, {pipeline_mode = #tpu.pipeline_mode<synchronous>, transform_indices = @transform_4, window_bounds = array<i64: 128, 128>}, {pipeline_mode = #tpu.pipeline_mode<synchronous>, transform_indices = @transform_5, window_bounds = array<i64: 1, 128>}, {transform_indices = @transform_6, window_bounds = array<i64: 128, 128>}]} {
    %c0_i32 = arith.constant 0 : i32
    %0 = arith.cmpi eq, %arg1, %c0_i32 : i32
    %1 = arith.extui %0 : i1 to i32
    %c0_i32_0 = arith.constant 0 : i32
    %2 = arith.cmpi ne, %1, %c0_i32_0 : i32
    scf.if %2 {
      %cst_10 = arith.constant 0.000000e+00 : f32
      %12 = vector.broadcast %cst_10 : f32 to vector<128x128xf32>
      %c0_11 = arith.constant 0 : index
      %c0_12 = arith.constant 0 : index
      %13 = vector.load %arg9[%c0_11, %c0_12] : memref<128x128xf32, #tpu.memory_space<vmem>>, vector<128x128xf32>
      tpu.vector_store %arg9[%c0_11, %c0_12], %12 {strides = array<i32>} : memref<128x128xf32, #tpu.memory_space<vmem>>, vector<128x128xf32>,
    } else {
    }
    %c0 = arith.constant 0 : index
    %c0_1 = arith.constant 0 : index
    %3 = vector.load %arg9[%c0, %c0_1] : memref<128x128xf32, #tpu.memory_space<vmem>>, vector<128x128xf32>
    %c0_2 = arith.constant 0 : index
    %c0_3 = arith.constant 0 : index
    %4 = vector.load %arg2[%c0_2, %c0_3] : memref<128x128xbf16, #tpu.memory_space<vmem>>, vector<128x128xbf16>
    %c0_4 = arith.constant 0 : index
    %c0_5 = arith.constant 0 : index
    %5 = vector.load %arg3[%c0_4, %c0_5] : memref<128x128xbf16, #tpu.memory_space<vmem>>, vector<128x128xbf16>
    %cst = arith.constant dense<0.000000e+00> : vector<128x128xf32>
    %6 = tpu.matmul %4, %5, %cst {dimension_numbers = #tpu.dot_dimension_numbers<[1], [0], [0], [1], [0, 0, 1, 1], [], []>} : vector<128x128xbf16>, vector<128x128xbf16>, vector<128x128xf32> -> vector<128x128xf32>
    %7 = arith.addf %3, %6 : vector<128x128xf32>
    %c0_6 = arith.constant 0 : index
    %c0_7 = arith.constant 0 : index
    %8 = vector.load %arg9[%c0_6, %c0_7] : memref<128x128xf32, #tpu.memory_space<vmem>>, vector<128x128xf32>
    tpu.vector_store %arg9[%c0_6, %c0_7], %7 {strides = array<i32>} : memref<128x128xf32, #tpu.memory_space<vmem>>, vector<128x128xf32>,
    %c0_i32_8 = arith.constant 0 : i32
    %9 = arith.cmpi eq, %arg1, %c0_i32_8 : i32
    %10 = arith.extui %9 : i1 to i32
    %c0_i32_9 = arith.constant 0 : i32
    %11 = arith.cmpi ne, %10, %c0_i32_9 : i32
    scf.if %11 {
      %c0_10 = arith.constant 0 : index
      %c0_11 = arith.constant 0 : index
      %12 = vector.load %arg4[%c0_10, %c0_11] : memref<128x128xbf16, #tpu.memory_space<vmem>>, vector<128x128xbf16>
      %c0_12 = arith.constant 0 : index
      %c0_13 = arith.constant 0 : index
      %13 = vector.load %arg5[%c0_12, %c0_13] : memref<128x128xbf16, #tpu.memory_space<vmem>>, vector<128x128xbf16>
      %cst_14 = arith.constant dense<0.000000e+00> : vector<128x128xf32>
      %14 = tpu.matmul %12, %13, %cst_14 {dimension_numbers = #tpu.dot_dimension_numbers<[1], [0], [0], [1], [0, 0, 1, 1], [], []>} : vector<128x128xbf16>, vector<128x128xbf16>, vector<128x128xf32> -> vector<128x128xf32>
      %c0_15 = arith.constant 0 : index
      %c0_16 = arith.constant 0 : index
      %15 = vector.load %arg9[%c0_15, %c0_16] : memref<128x128xf32, #tpu.memory_space<vmem>>, vector<128x128xf32>
      %16 = arith.truncf %15 : vector<128x128xf32> to vector<128x128xbf16>
      %c0_17 = arith.constant 0 : index
      %c0_18 = arith.constant 0 : index
      %17 = vector.load %arg6[%c0_17, %c0_18] : memref<128x128xbf16, #tpu.memory_space<vmem>>, vector<128x128xbf16>
      %cst_19 = arith.constant dense<0.000000e+00> : vector<128x128xf32>
      %18 = tpu.matmul %16, %17, %cst_19 {dimension_numbers = #tpu.dot_dimension_numbers<[1], [0], [0], [1], [0, 0, 1, 1], [], []>} : vector<128x128xbf16>, vector<128x128xbf16>, vector<128x128xf32> -> vector<128x128xf32>
      %19 = arith.addf %14, %18 : vector<128x128xf32>
      %c0_20 = arith.constant 0 : index
      %c0_21 = arith.constant 0 : index
      %20 = vector.load %arg7[%c0_20, %c0_21] : memref<1x128xf32, #tpu.memory_space<vmem>>, vector<1x128xf32>
      %21 = vector.broadcast %20 : vector<1x128xf32> to vector<128x128xf32>
      %22 = arith.addf %19, %21 : vector<128x128xf32>
      %23 = arith.truncf %22 : vector<128x128xf32> to vector<128x128xbf16>
      %c0_22 = arith.constant 0 : index
      %c0_23 = arith.constant 0 : index
      %24 = vector.load %arg8[%c0_22, %c0_23] : memref<128x128xbf16, #tpu.memory_space<vmem>>, vector<128x128xbf16>
      tpu.vector_store %arg8[%c0_22, %c0_23], %23 {strides = array<i32>} : memref<128x128xbf16, #tpu.memory_space<vmem>>, vector<128x128xbf16>,
    } else {
    }
    return
  }
  func.func @transform_0(%arg0: i32, %arg1: i32) -> (i32, i32) {
    %c0_i32 = arith.constant 0 : i32
    return %arg0, %arg1 : i32, i32
  }
  func.func @transform_1(%arg0: i32, %arg1: i32) -> (i32, i32) {
    %c0_i32 = arith.constant 0 : i32
    %c0_i32_0 = arith.constant 0 : i32
    return %arg1, %c0_i32 : i32, i32
  }
  func.func @transform_2(%arg0: i32, %arg1: i32) -> (i32, i32) {
    %c0_i32 = arith.constant 0 : i32
    %c0_i32_0 = arith.constant 0 : i32
    return %arg0, %c0_i32 : i32, i32
  }
  func.func @transform_3(%arg0: i32, %arg1: i32) -> (i32, i32) {
    %c0_i32 = arith.constant 0 : i32
    %c0_i32_0 = arith.constant 0 : i32
    %c0_i32_1 = arith.constant 0 : i32
    return %c0_i32, %c0_i32_0 : i32, i32
  }
  func.func @transform_4(%arg0: i32, %arg1: i32) -> (i32, i32) {
    %c0_i32 = arith.constant 0 : i32
    %c0_i32_0 = arith.constant 0 : i32
    %c0_i32_1 = arith.constant 0 : i32
    return %c0_i32, %c0_i32_0 : i32, i32
  }
  func.func @transform_5(%arg0: i32, %arg1: i32) -> (i32, i32) {
    %c0_i32 = arith.constant 0 : i32
    %c0_i32_0 = arith.constant 0 : i32
    %c0_i32_1 = arith.constant 0 : i32
    return %c0_i32, %c0_i32_0 : i32, i32
  }
  func.func @transform_6(%arg0: i32, %arg1: i32) -> (i32, i32) {
    %c0_i32 = arith.constant 0 : i32
    %c0_i32_0 = arith.constant 0 : i32
    return %arg0, %c0_i32 : i32, i32
  }
}

</mosaic_0001>

<bundles_post_ra>
// kernel: model_forward.3
= control target key start
LH: loop header
LB: loop body
LE: loop exit
PB: predicated region body
PF: predicated region fallthrough
CT: control target
= control target key end

     0   :  { %11 = vsyncpa [#allocation4], 0  ;;  %s1567_s0 = inlined_call_operand.hbm [shape: bf16[128,128], index: 0, kind: input, shape index: {}]   ;;  %s1568_s1 = inlined_call_operand.hbm [shape: bf16[128,128], index: 1, kind: input, shape index: {}, may-alias: {1,2}]   ;;  %s1569_s2 = inlined_call_operand.hbm [shape: bf16[128,128], index: 2, kind: input, shape index: {}, may-alias: {1,2}]   ;;  %s1570_s3 = inlined_call_operand.hbm [shape: bf16[128,128], index: 3, kind: input, shape index: {}]   ;;  %s1571_s4 = inlined_call_operand.hbm [shape: bf16[128,128], index: 4, kind: input, shape index: {}]   ;;  %s1572_s5 = inlined_call_operand.vmem [shape: f32[1,128], index: 5, kind: input, shape index: {}]   ;;  %s1573_s6 = inlined_call_operand.vmem [shape: bf16[128,128], index: 6, kind: output, shape index: {}]  }
   0x1   :  { %12 = vsyncpa [#allocation6], 0 }
   0x2   :  { %13 = vsyncpa [#allocation9], 0  ;;  %s1367_s21 = smov [#allocation5]   ;;  %s1368_s23 = smov [#allocation8]  }
   0x3   :  { %s31_s22 = sshll.u32 %s1367_s21, 4  ;;  %s55_s24 = sshll.u32 %s1368_s23, 4  ;;  %s32_s22 = int_to_ptr.vmem [resolvable:$true] %s31_s22  ;;  %s1409_s24 = int_to_ptr.vmem [resolvable:$true] %s55_s24 }
   0x4   :  { %s1251_s27 = scalar_lea.hbm %s1568_s1, 1024 }
   0x5   :  { %p1252_p0 = scmp.ne.s32.totalorder %s1568_s1, %s1251_s27  ;;  %p1255_p1 = scmp.lt.u32.totalorder %s1251_s27, %s1568_s1 }
   0x7   :  { %p1257_p2 = pnand %p1255_p1, %p1252_p0 }
   0x9   :  { %1260 = shalt.err (!%p1257_p2)
}
   0xa   :  { %s1261_s8 = scalar_lea.vmem %s32_s22, 1024  ;;  %p1266_p4 = scmp.lt.s32.totalorder %s32_s22, %s32_s22 }
   0xb   :  { %p1262_p3 = scmp.ne.s32.totalorder %s32_s22, %s1261_s8  ;;  %p1267_p5 = scmp.lt.s32.totalorder %s1261_s8, %s1261_s8 }
   0xd   :  { %p1268_p6 = por %p1267_p5, %p1266_p4 }
   0xf   :  { %p1269_p7 = pnand %p1268_p6, %p1262_p3 }
  0x11   :  { %1272 = shalt.err (!%p1269_p7)
}
  0x12   :  { %s1369_s9 = smov 64   ;;  %s1370_s10 = smov 4  }
  0x13   :  { %37 = dma.hbm_to_vmem [thread:$0]  %s1568_s1, 1024, %s32_s22, [#allocation6], %s1369_s9, %s1369_s9, %s1370_s10  }
  0x14   :  { %s1273_s15 = scalar_lea.hbm %s1570_s3, 1024 }
  0x15   :  { %p1274_p8 = scmp.ne.s32.totalorder %s1570_s3, %s1273_s15  ;;  %p1277_p9 = scmp.lt.u32.totalorder %s1273_s15, %s1570_s3 }
  0x17   :  { %p1279_p10 = pnand %p1277_p9, %p1274_p8 }
  0x19   :  { %1282 = shalt.err (!%p1279_p10)
}
  0x1a   :  { %s1283_s20 = scalar_lea.vmem %s1409_s24, 1024  ;;  %p1288_p12 = scmp.lt.s32.totalorder %s1409_s24, %s1409_s24 }
  0x1b   :  { %p1284_p11 = scmp.ne.s32.totalorder %s1409_s24, %s1283_s20  ;;  %p1289_p13 = scmp.lt.s32.totalorder %s1283_s20, %s1283_s20 }
  0x1d   :  { %p1290_p0 = por %p1289_p13, %p1288_p12 }
  0x1f   :  { %p1291_p1 = pnand %p1290_p0, %p1284_p11 }
  0x21   :  { %1294 = shalt.err (!%p1291_p1)
}
  0x22   :  { %61 = dma.hbm_to_vmem [thread:$0]  %s1570_s3, 1024, %s1409_s24, [#allocation9], %s1369_s9, %s1369_s9, %s1370_s10  }
  0x23   :  { %s1371_s22 = smov [#allocation3]   ;;  %s1372_s25 = smov [#allocation7]  }
  0x24   :  { %s19_s23 = sshll.u32 %s1371_s22, 4  ;;  %s43_s26 = sshll.u32 %s1372_s25, 4  ;;  %s20_s23 = int_to_ptr.vmem [resolvable:$true] %s19_s23  ;;  %s1446_s26 = int_to_ptr.vmem [resolvable:$true] %s43_s26 }
  0x25   :  { %s1295_s29 = scalar_lea.hbm %s1567_s0, 1024 }
  0x26   :  { %p1296_p2 = scmp.ne.s32.totalorder %s1567_s0, %s1295_s29  ;;  %p1299_p3 = scmp.lt.u32.totalorder %s1295_s29, %s1567_s0 }
  0x28   :  { %p1301_p4 = pnand %p1299_p3, %p1296_p2 }
  0x2a   :  { %1304 = shalt.err (!%p1301_p4)
}
  0x2b   :  { %s1305_s3 = scalar_lea.vmem %s20_s23, 1024  ;;  %p1310_p6 = scmp.lt.s32.totalorder %s20_s23, %s20_s23 }
  0x2c   :  { %p1306_p5 = scmp.ne.s32.totalorder %s20_s23, %s1305_s3  ;;  %p1311_p7 = scmp.lt.s32.totalorder %s1305_s3, %s1305_s3 }
  0x2e   :  { %p1312_p8 = por %p1311_p7, %p1310_p6 }
  0x30   :  { %p1313_p9 = pnand %p1312_p8, %p1306_p5 }
  0x32   :  { %1316 = shalt.err (!%p1313_p9)
}
  0x33   :  { %25 = dma.hbm_to_vmem [thread:$0]  %s1567_s0, 1024, %s20_s23, [#allocation4], %s1369_s9, %s1369_s9, %s1370_s10  }
  0x34   :  { %s1317_s15 = scalar_lea.hbm %s1569_s2, 1024 }
  0x35   :  { %p1318_p10 = scmp.ne.s32.totalorder %s1569_s2, %s1317_s15  ;;  %p1321_p11 = scmp.lt.u32.totalorder %s1317_s15, %s1569_s2 }
  0x37   :  { %p1323_p12 = pnand %p1321_p11, %p1318_p10 }
  0x39   :  { %1326 = shalt.err (!%p1323_p12)
}
  0x3a   :  { %s1327_s20 = scalar_lea.vmem %s1446_s26, 1024  ;;  %p1332_p0 = scmp.lt.s32.totalorder %s1446_s26, %s1446_s26 }
  0x3b   :  { %p1328_p13 = scmp.ne.s32.totalorder %s1446_s26, %s1327_s20  ;;  %p1333_p1 = scmp.lt.s32.totalorder %s1327_s20, %s1327_s20 }
  0x3d   :  { %p1334_p2 = por %p1333_p1, %p1332_p0 }
  0x3f   :  { %p1335_p3 = pnand %p1334_p2, %p1328_p13 }
  0x41   :  { %1338 = shalt.err (!%p1335_p3)
}
  0x42   :  { %49 = dma.hbm_to_vmem [thread:$0]  %s1569_s2, 1024, %s1446_s26, [#allocation6], %s1369_s9, %s1369_s9, %s1370_s10  }
  0x43   :  { %s1373_s21 = smov [#allocation10]   ;;  %s1339_s27 = scalar_lea.hbm %s1571_s4, 1024 }
  0x44   :  { %s67_s22 = sshll.u32 %s1373_s21, 4  ;;  %p1340_p4 = scmp.ne.s32.totalorder %s1571_s4, %s1339_s27  ;;  %s68_s22 = int_to_ptr.vmem [resolvable:$true] %s67_s22 }
  0x45   :  { %p1343_p5 = scmp.lt.u32.totalorder %s1339_s27, %s1571_s4 }
  0x47   :  { %p1345_p6 = pnand %p1343_p5, %p1340_p4 }
  0x49   :  { %1348 = shalt.err (!%p1345_p6)
}
  0x4a   :  { %s1349_s8 = scalar_lea.vmem %s68_s22, 1024  ;;  %p1354_p8 = scmp.lt.s32.totalorder %s68_s22, %s68_s22 }
  0x4b   :  { %p1350_p7 = scmp.ne.s32.totalorder %s68_s22, %s1349_s8  ;;  %p1355_p9 = scmp.lt.s32.totalorder %s1349_s8, %s1349_s8 }
  0x4d   :  { %p1356_p10 = por %p1355_p9, %p1354_p8 }
  0x4f   :  { %p1357_p11 = pnand %p1356_p10, %p1350_p7 }
  0x51   :  { %1360 = shalt.err (!%p1357_p11)
}
  0x52   :  { %73 = dma.hbm_to_vmem [thread:$0]  %s1571_s4, 1024, %s68_s22, [#allocation9], %s1369_s9, %s1369_s9, %s1370_s10  }
  0x53   :  { %1361 = dma.done.wait [#allocation4], 1024  }
  0x54   :  { %1362 = vsyncadd [#allocation4], 4294966272 }
  0x55   :  { %1363 = dma.done.wait [#allocation6], 2048  }
  0x56   :  { %1364 = vsyncadd [#allocation6], 4294965248 }
  0x57   :  { %1365 = dma.done.wait [#allocation9], 2048  }
  0x58   :  { %1366 = vsyncadd [#allocation9], 4294965248  ;;  %v1211_v0 = vld [vmem:[#allocation5] sm:$0xff]   ;;  %v1212_v1 = vld [vmem:[#allocation5 + $0x8] sm:$0xff]  }
  0x59   :  { %1076 = vmatprep.subr.bf16.mxu0 %v1211_v0  ;;  %v1213_v2 = vld [vmem:[#allocation5 + $0x10] sm:$0xff]   ;;  %v1214_v3 = vld [vmem:[#allocation5 + $0x18] sm:$0xff]   ;;  %v1219_v4 = vld [vmem:[#allocation3] sm:$0xff]  }
  0x5a   :  { %1077 = vmatpush3.bf16.msra.mxu0 %v1211_v0  ;;  %1092 = vmatprep.mubr.bf16.mxu0 %v1219_v4  ;;  %v1215_v5 = vld [vmem:[#allocation5 + $0x20] sm:$0xff]   ;;  %v1216_v6 = vld [vmem:[#allocation5 + $0x28] sm:$0xff]   ;;  %v1217_v9 = vld [vmem:[#allocation5 + $0x30] sm:$0xff]  }
  0x5b   :  { %1078 = vmatprep.subr.bf16.mxu0 %v1212_v1  ;;  %v1227_v7 = vld [vmem:[#allocation10] sm:$0xff]   ;;  %v1229_v8 = vld [vmem:[#allocation10 + $0x8] sm:$0xff]   ;;  %v1231_v10 = vld [vmem:[#allocation10 + $0x10] sm:$0xff]  }
  0x5c   :  { %1108 = vmatprep.subr.bf16.mxu1 %v1227_v7  ;;  %v1218_v11 = vld [vmem:[#allocation5 + $0x38] sm:$0xff]   ;;  %v1498_v13 = vld [vmem:[#allocation8] sm:$0xff]   ;;  %v1220_v14 = vld [vmem:[#allocation3 + $0x8] sm:$0xff]  }
  0x5d   :  { %1109 = vmatpush3.bf16.msra.mxu1 %v1227_v7  ;;  %v1233_v12 = vld [vmem:[#allocation10 + $0x18] sm:$0xff]   ;;  %v1235_v15 = vld [vmem:[#allocation10 + $0x20] sm:$0xff]   ;;  %v1221_v16 = vld [vmem:[#allocation3 + $0x10] sm:$0xff]  }
  0x5e   :  { %1079 = vmatpush3.bf16.msra.mxu0 %v1212_v1  ;;  %1110 = vmatprep.subr.bf16.mxu1 %v1229_v8  ;;  %v1500_v17 = vld [vmem:[#allocation8 + $0x8] sm:$0xff]   ;;  %v1505_v19 = vld [vmem:[#allocation8 + $0x10] sm:$0xff]   ;;  %v1222_v21 = vld [vmem:[#allocation3 + $0x18] sm:$0xff]  }
  0x5f   :  { %1080 = vmatprep.subr.bf16.mxu0 %v1213_v2  ;;  %v1237_v18 = vld [vmem:[#allocation10 + $0x28] sm:$0xff]   ;;  %v1239_v20 = vld [vmem:[#allocation10 + $0x30] sm:$0xff]   ;;  %v1223_v22 = vld [vmem:[#allocation3 + $0x20] sm:$0xff]  }
  0x60   :  { %v1509_v23 = vld [vmem:[#allocation8 + $0x18] sm:$0xff]   ;;  %v1513_v24 = vld [vmem:[#allocation8 + $0x20] sm:$0xff]   ;;  %v1224_v25 = vld [vmem:[#allocation3 + $0x28] sm:$0xff]  }
  0x61   :  { %1111 = vmatpush3.bf16.msra.mxu1 %v1229_v8  ;;  %v1225_v26 = vld [vmem:[#allocation3 + $0x30] sm:$0xff]   ;;  %v1517_v27 = vld [vmem:[#allocation8 + $0x28] sm:$0xff]   ;;  %v1226_v29 = vld [vmem:[#allocation3 + $0x38] sm:$0xff]  }
  0x62   :  { %1081 = vmatpush3.bf16.msra.mxu0 %v1213_v2  ;;  %1112 = vmatprep.subr.bf16.mxu1 %v1231_v10  ;;  %v1521_v28 = vld [vmem:[#allocation8 + $0x30] sm:$0xff]   ;;  %v1241_v30 = vld [vmem:[#allocation10 + $0x38] sm:$0xff]   ;;  %v1243_v32 = vld [vmem:[#allocation7] sm:$0xff]  }
  0x63   :  { %1082 = vmatprep.subr.bf16.mxu0 %v1214_v3  ;;  %v1242_v31 = vld [vmem:[#allocation8 + $0x38] sm:$0xff]   ;;  %v1244_v33 = vld [vmem:[#allocation7 + $0x8] sm:$0xff]   ;;  %v1245_v34 = vld [vmem:[#allocation7 + $0x10] sm:$0xff]  }
  0x64   :  { %v1246_v35 = vld [vmem:[#allocation7 + $0x18] sm:$0xff]   ;;  %v1247_v60 = vld [vmem:[#allocation7 + $0x20] sm:$0xff]   ;;  %v1248_v61 = vld [vmem:[#allocation7 + $0x28] sm:$0xff]  }
  0x65   :  { %1113 = vmatpush3.bf16.msra.mxu1 %v1231_v10  ;;  %v1249_v62 = vld [vmem:[#allocation7 + $0x30] sm:$0xff]   ;;  %v1250_v63 = vld [vmem:[#allocation7 + $0x38] sm:$0xff]  }
  0x66   :  { %1083 = vmatpush3.bf16.msra.mxu0 %v1214_v3  ;;  %1114 = vmatprep.subr.bf16.mxu1 %v1233_v12 }
  0x67   :  { %1084 = vmatprep.subr.bf16.mxu0 %v1215_v5 }
  0x69   :  { %1115 = vmatpush3.bf16.msra.mxu1 %v1233_v12 }
  0x6a   :  { %1085 = vmatpush3.bf16.msra.mxu0 %v1215_v5  ;;  %1116 = vmatprep.subr.bf16.mxu1 %v1235_v15 }
  0x6b   :  { %1086 = vmatprep.subr.bf16.mxu0 %v1216_v6 }
  0x6d   :  { %1117 = vmatpush3.bf16.msra.mxu1 %v1235_v15 }
  0x6e   :  { %1087 = vmatpush3.bf16.msra.mxu0 %v1216_v6  ;;  %1118 = vmatprep.subr.bf16.mxu1 %v1237_v18 }
  0x6f   :  { %1088 = vmatprep.subr.bf16.mxu0 %v1217_v9 }
  0x71   :  { %1119 = vmatpush3.bf16.msra.mxu1 %v1237_v18 }
  0x72   :  { %1089 = vmatpush3.bf16.msra.mxu0 %v1217_v9  ;;  %1120 = vmatprep.subr.bf16.mxu1 %v1239_v20 }
  0x73   :  { %1090 = vmatprep.subr.bf16.mxu0 %v1218_v11 }
  0x75   :  { %1121 = vmatpush3.bf16.msra.mxu1 %v1239_v20 }
  0x76   :  { %1091 = vmatpush3.bf16.msra.mxu0 %v1218_v11  ;;  %1122 = vmatprep.subr.bf16.mxu1 %v1241_v30  ;;  %v948_v11 = vld [vmem:[%s1572_s5] ss:$0 sm:$0xff] }
  0x77   :  { %1140 = vmatprep.subr.bf16.mxu0 %v1498_v13 }
  0x79   :  { %1093 = vmatmul.mubr.bf16.vlgmr.msra.gmra.mrb[0].mxu0 %v1220_v14  ;;  %1123 = vmatpush3.bf16.msra.mxu1 %v1241_v30 }
  0x7a   :  { %1096 = vmatprep.mubr.bf16.mxu0 %v1221_v16  ;;  %1141 = vmatpush3.bf16.msra.mxu0 %v1498_v13 }
  0x7b   :  { %1142 = vmatprep.subr.bf16.mxu0 %v1500_v17  ;;  %1172 = vmatprep.subr.bf16.mxu1 %v1498_v13 }
  0x7e   :  { %1143 = vmatpush3.bf16.msra.mxu0 %v1500_v17 }
  0x7f   :  { %1144 = vmatprep.subr.bf16.mxu0 %v1505_v19 }
  0x81   :  { %1097 = vmatmul.mubr.bf16.gmra.mrb[4].mxu0 %v1222_v21 }
  0x82   :  { %1100 = vmatprep.mubr.bf16.mxu0 %v1223_v22  ;;  %1145 = vmatpush3.bf16.msra.mxu0 %v1505_v19 }
  0x83   :  { %1146 = vmatprep.subr.bf16.mxu0 %v1509_v23 }
  0x86   :  { %1147 = vmatpush3.bf16.msra.mxu0 %v1509_v23 }
  0x87   :  { %1148 = vmatprep.subr.bf16.mxu0 %v1513_v24 }
  0x89   :  { %1101 = vmatmul.mubr.bf16.gmra.mrb[8].mxu0 %v1224_v25 }
  0x8a   :  { %1104 = vmatprep.mubr.bf16.mxu0 %v1225_v26  ;;  %1149 = vmatpush3.bf16.msra.mxu0 %v1513_v24 }
  0x8b   :  { %1150 = vmatprep.subr.bf16.mxu0 %v1517_v27 }
  0x8e   :  { %1151 = vmatpush3.bf16.msra.mxu0 %v1517_v27 }
  0x8f   :  { %1152 = vmatprep.subr.bf16.mxu0 %v1521_v28 }
  0x91   :  { %1105 = vmatmul.mubr.bf16.gmra.mrb[12].mxu0 %v1226_v29 }
  0x92   :  { %1153 = vmatpush3.bf16.msra.mxu0 %v1521_v28  ;;  %1156 = vmatprep.mubr.bf16.mxu0 %v1243_v32 }
  0x93   :  { %1154 = vmatprep.subr.bf16.mxu0 %v1242_v31 }
  0x96   :  { %1155 = vmatpush3.bf16.msra.mxu0 %v1242_v31 }
  0x99   :  { %1157 = vmatmul.mubr.bf16.vlgmr.msra.gmra.mrb[16].mxu0 %v1244_v33 }
  0x9a   :  { %1160 = vmatprep.mubr.bf16.mxu0 %v1245_v34 }
  0xa1   :  { %1161 = vmatmul.mubr.bf16.gmra.mrb[20].mxu0 %v1246_v35 }
 0x14c   :  { %v1094_v36 = vpop.f32.mrb[0].mxu0 }
 0x14d   :  { %v290_v37 = vpop.f32.mrb[1].mxu0 }
 0x14e   :  { %v1095_v38 = vpop.f32.mrb[2].mxu0 }
 0x14f   :  { %v437_v39 = vpack.c.bf16 %v1095_v38, %v1094_v36  ;;  %v293_v40 = vpop.f32.mrb[3].mxu0 }
 0x150   :  { %v436_v41 = vpack.c.bf16 %v293_v40, %v290_v37 }
 0x152   :  { %1124 = vmatprep.mubr.bf16.mxu1 %v436_v41 }
 0x153   :  { %1125 = vmatmul.mubr.bf16.vlgmr.msra.gmra.mrb[0].mxu1 %v437_v39 }
 0x154   :  { %1180 = vmatpush3.bf16.msra.mxu1 %v1498_v13  ;;  %v1098_v42 = vpop.f32.mrb[4].mxu0 }
 0x155   :  { %v306_v43 = vpop.f32.mrb[5].mxu0  ;;  %1173 = vmatprep.subr.bf16.mxu1 %v1500_v17 }
 0x156   :  { %v1099_v44 = vpop.f32.mrb[6].mxu0 }
 0x157   :  { %v439_v45 = vpack.c.bf16 %v1099_v44, %v1098_v42  ;;  %v309_v46 = vpop.f32.mrb[7].mxu0 }
 0x158   :  { %v438_v47 = vpack.c.bf16 %v309_v46, %v306_v43  ;;  %1181 = vmatpush3.bf16.msra.mxu1 %v1500_v17 }
 0x159   :  { %1174 = vmatprep.subr.bf16.mxu1 %v1505_v19 }
 0x15a   :  { %1128 = vmatprep.mubr.bf16.mxu1 %v438_v47 }
 0x15b   :  { %1129 = vmatmul.mubr.bf16.gmra.mrb[4].mxu1 %v439_v45 }
 0x15c   :  { %1182 = vmatpush3.bf16.msra.mxu1 %v1505_v19  ;;  %v1102_v48 = vpop.f32.mrb[8].mxu0 }
 0x15d   :  { %v322_v49 = vpop.f32.mrb[9].mxu0  ;;  %1175 = vmatprep.subr.bf16.mxu1 %v1509_v23 }
 0x15e   :  { %v1103_v50 = vpop.f32.mrb[10].mxu0 }
 0x15f   :  { %v441_v51 = vpack.c.bf16 %v1103_v50, %v1102_v48  ;;  %v325_v52 = vpop.f32.mrb[11].mxu0 }
 0x160   :  { %v440_v53 = vpack.c.bf16 %v325_v52, %v322_v49  ;;  %1183 = vmatpush3.bf16.msra.mxu1 %v1509_v23 }
 0x161   :  { %1176 = vmatprep.subr.bf16.mxu1 %v1513_v24 }
 0x162   :  { %1132 = vmatprep.mubr.bf16.mxu1 %v440_v53 }
 0x163   :  { %1133 = vmatmul.mubr.bf16.gmra.mrb[8].mxu1 %v441_v51 }
 0x164   :  { %1184 = vmatpush3.bf16.msra.mxu1 %v1513_v24  ;;  %v1106_v54 = vpop.f32.mrb[12].mxu0 }
 0x165   :  { %v338_v55 = vpop.f32.mrb[13].mxu0  ;;  %1177 = vmatprep.subr.bf16.mxu1 %v1517_v27 }
 0x166   :  { %v1107_v56 = vpop.f32.mrb[14].mxu0 }
 0x167   :  { %v443_v57 = vpack.c.bf16 %v1107_v56, %v1106_v54  ;;  %v341_v58 = vpop.f32.mrb[15].mxu0 }
 0x168   :  { %v442_v59 = vpack.c.bf16 %v341_v58, %v338_v55  ;;  %1185 = vmatpush3.bf16.msra.mxu1 %v1517_v27 }
 0x169   :  { %1178 = vmatprep.subr.bf16.mxu1 %v1521_v28 }
 0x16a   :  { %1136 = vmatprep.mubr.bf16.mxu1 %v442_v59 }
 0x16b   :  { %1137 = vmatmul.mubr.bf16.gmra.mrb[12].mxu1 %v443_v57 }
 0x16c   :  { %1186 = vmatpush3.bf16.msra.mxu1 %v1521_v28  ;;  %1164 = vmatprep.mubr.bf16.mxu1 %v1247_v60  ;;  %v1158_v0 = vpop.f32.mrb[16].mxu0 }
 0x16d   :  { %1179 = vmatprep.subr.bf16.mxu1 %v1242_v31  ;;  %v735_v1 = vpop.f32.mrb[17].mxu0 }
 0x16e   :  { %v1159_v2 = vpop.f32.mrb[18].mxu0 }
 0x16f   :  { %v738_v3 = vpop.f32.mrb[19].mxu0 }
 0x170   :  { %1187 = vmatpush3.bf16.msra.mxu1 %v1242_v31 }
 0x173   :  { %1165 = vmatmul.mubr.bf16.vlgmr.msra.gmra.mrb[8].mxu1 %v1248_v61 }
 0x174   :  { %1168 = vmatprep.mubr.bf16.mxu1 %v1249_v62  ;;  %v1162_v4 = vpop.f32.mrb[20].mxu0 }
 0x175   :  { %v751_v5 = vpop.f32.mrb[21].mxu0 }
 0x176   :  { %v1163_v6 = vpop.f32.mrb[22].mxu0 }
 0x177   :  { %v754_v7 = vpop.f32.mrb[23].mxu0 }
 0x17b   :  { %1169 = vmatmul.mubr.bf16.gmra.mrb[12].mxu1 %v1250_v63 }
 0x226   :  { %v1126_v8 = vpop.f32.mrb[0].mxu1 }
 0x227   :  { %v744_v9 = vadd.f32 %v1158_v0, %v1126_v8  ;;  %v542_v10 = vpop.f32.mrb[1].mxu1 }
 0x228   :  { %v736_v12 = vadd.f32 %v735_v1, %v542_v10  ;;  %v1127_v13 = vpop.f32.mrb[2].mxu1 }
 0x229   :  { %v747_v14 = vadd.f32 %v1159_v2, %v1127_v13  ;;  %v545_v15 = vpop.f32.mrb[3].mxu1  ;;  %v807_v17 = vadd.f32 %v948_v11, %v744_v9 }
 0x22a   :  { %v739_v16 = vadd.f32 %v738_v3, %v545_v15  ;;  %v805_v19 = vadd.f32 %v948_v11, %v736_v12 }
 0x22b   :  { %v808_v18 = vadd.f32 %v948_v11, %v747_v14 }
 0x22c   :  { %v806_v20 = vadd.f32 %v948_v11, %v739_v16 }
 0x22d   :  { %v989_v21 = vpack.c.bf16 %v808_v18, %v807_v17 }
 0x22e   :  { %v984_v22 = vpack.c.bf16 %v806_v20, %v805_v19  ;;  %v1130_v23 = vpop.f32.mrb[4].mxu1 }
 0x22f   :  { %1021 = vst [vmem:[%s1573_s6 + $0x8] sm:$0xff] %v989_v21   ;;  %v760_v24 = vadd.f32 %v1162_v4, %v1130_v23  ;;  %v558_v25 = vpop.f32.mrb[5].mxu1 }
 0x230   :  { %985 = vst [vmem:[%s1573_s6] sm:$0xff] %v984_v22   ;;  %v752_v26 = vadd.f32 %v751_v5, %v558_v25  ;;  %v1131_v27 = vpop.f32.mrb[6].mxu1 }
 0x231   :  { %v763_v28 = vadd.f32 %v1163_v6, %v1131_v27  ;;  %v561_v29 = vpop.f32.mrb[7].mxu1  ;;  %v811_v31 = vadd.f32 %v948_v11, %v760_v24 }
 0x232   :  { %v755_v30 = vadd.f32 %v754_v7, %v561_v29  ;;  %v809_v33 = vadd.f32 %v948_v11, %v752_v26 }
 0x233   :  { %v812_v32 = vadd.f32 %v948_v11, %v763_v28 }
 0x234   :  { %v810_v34 = vadd.f32 %v948_v11, %v755_v30 }
 0x235   :  { %v999_v35 = vpack.c.bf16 %v812_v32, %v811_v31 }
 0x236   :  { %v994_v36 = vpack.c.bf16 %v810_v34, %v809_v33 }
 0x237   :  { %1023 = vst [vmem:[%s1573_s6 + $0x18] sm:$0xff] %v999_v35  }
 0x238   :  { %1022 = vst [vmem:[%s1573_s6 + $0x10] sm:$0xff] %v994_v36  }
 0x246   :  { %v1166_v37 = vpop.f32.mrb[8].mxu1 }
 0x247   :  { %v767_v38 = vpop.f32.mrb[9].mxu1  ;;  %v815_v40 = vadd.f32 %v1166_v37, %v948_v11 }
 0x248   :  { %v1167_v39 = vpop.f32.mrb[10].mxu1  ;;  %v813_v43 = vadd.f32 %v948_v11, %v767_v38 }
 0x249   :  { %v816_v41 = vadd.f32 %v1167_v39, %v948_v11  ;;  %v770_v42 = vpop.f32.mrb[11].mxu1 }
 0x24a   :  { %v814_v44 = vadd.f32 %v948_v11, %v770_v42 }
 0x24b   :  { %v1009_v45 = vpack.c.bf16 %v816_v41, %v815_v40 }
 0x24c   :  { %v1004_v46 = vpack.c.bf16 %v814_v44, %v813_v43 }
 0x24d   :  { %1025 = vst [vmem:[%s1573_s6 + $0x28] sm:$0xff] %v1009_v45  }
 0x24e   :  { %1024 = vst [vmem:[%s1573_s6 + $0x20] sm:$0xff] %v1004_v46   ;;  %v1170_v47 = vpop.f32.mrb[12].mxu1 }
 0x24f   :  { %v783_v48 = vpop.f32.mrb[13].mxu1  ;;  %v819_v50 = vadd.f32 %v1170_v47, %v948_v11 }
 0x250   :  { %v1171_v49 = vpop.f32.mrb[14].mxu1  ;;  %v817_v53 = vadd.f32 %v948_v11, %v783_v48 }
 0x251   :  { %v820_v51 = vadd.f32 %v1171_v49, %v948_v11  ;;  %v786_v52 = vpop.f32.mrb[15].mxu1 }
 0x252   :  { %v818_v54 = vadd.f32 %v948_v11, %v786_v52 }
 0x253   :  { %v1019_v55 = vpack.c.bf16 %v820_v51, %v819_v50 }
 0x254   :  { %v1014_v56 = vpack.c.bf16 %v818_v54, %v817_v53 }
 0x255   :  { %1027 = vst [vmem:[%s1573_s6 + $0x38] sm:$0xff] %v1019_v55  }
 0x256   :  { %1026 = vst [vmem:[%s1573_s6 + $0x30] sm:$0xff] %v1014_v56  }
 0x257   :  { %905 = vsyncpa [#allocation4], 1 }
 0x258   :  { %906 = vsyncpa [#allocation6], 1 }
 0x259   :  { %907 = vsyncpa [#allocation9], 1 }

// kernel: model_forward.5
= control target key start
LH: loop header
LB: loop body
LE: loop exit
PB: predicated region body
PF: predicated region fallthrough
CT: control target
= control target key end

     0   :  { %s1285_s0 = inlined_call_operand.vmem [shape: bf16[128,128], index: 0, kind: input, shape index: {}]   ;;  %s1286_s1 = inlined_call_operand.vmem [shape: bf16[128,128], index: 1, kind: input, shape index: {}, may-alias: {1,2}]   ;;  %s1287_s2 = inlined_call_operand.vmem [shape: bf16[128,128], index: 2, kind: input, shape index: {}, may-alias: {1,2}]   ;;  %s1288_s3 = inlined_call_operand.vmem [shape: bf16[128,128], index: 3, kind: input, shape index: {}]   ;;  %s1289_s4 = inlined_call_operand.vmem [shape: bf16[128,128], index: 4, kind: input, shape index: {}]   ;;  %s1290_s5 = inlined_call_operand.vmem [shape: f32[1,128], index: 5, kind: input, shape index: {}]   ;;  %s1291_s6 = inlined_call_operand.hbm [shape: f32[128,128], index: 6, kind: output, shape index: {}]  }
   0x1   :  { %v1006_v0 = vld [vmem:[%s1286_s1] sm:$0xff]   ;;  %v1007_v1 = vld [vmem:[%s1286_s1 + $0x8] sm:$0xff]   ;;  %v1008_v2 = vld [vmem:[%s1286_s1 + $0x10] sm:$0xff]  }
   0x2   :  { %875 = vmatprep.subr.bf16.mxu0 %v1006_v0  ;;  %v1009_v3 = vld [vmem:[%s1286_s1 + $0x18] sm:$0xff]   ;;  %v1014_v4 = vld [vmem:[%s1285_s0] sm:$0xff]   ;;  %v1011_v6 = vld [vmem:[%s1286_s1 + $0x28] sm:$0xff]  }
   0x3   :  { %876 = vmatpush3.bf16.msra.mxu0 %v1006_v0  ;;  %891 = vmatprep.mubr.bf16.mxu0 %v1014_v4  ;;  %v1010_v5 = vld [vmem:[%s1286_s1 + $0x20] sm:$0xff]   ;;  %v1024_v8 = vld [vmem:[%s1289_s4 + $0x8] sm:$0xff]   ;;  %v1012_v9 = vld [vmem:[%s1286_s1 + $0x30] sm:$0xff]  }
   0x4   :  { %877 = vmatprep.subr.bf16.mxu0 %v1007_v1  ;;  %v1022_v7 = vld [vmem:[%s1289_s4] sm:$0xff]   ;;  %v1026_v10 = vld [vmem:[%s1289_s4 + $0x10] sm:$0xff]   ;;  %v1013_v11 = vld [vmem:[%s1286_s1 + $0x38] sm:$0xff]  }
   0x5   :  { %907 = vmatprep.subr.bf16.mxu1 %v1022_v7  ;;  %v1028_v12 = vld [vmem:[%s1289_s4 + $0x18] sm:$0xff]   ;;  %v1150_v13 = vld [vmem:[%s1288_s3] sm:$0xff]   ;;  %v1015_v14 = vld [vmem:[%s1285_s0 + $0x8] sm:$0xff]  }
   0x6   :  { %908 = vmatpush3.bf16.msra.mxu1 %v1022_v7  ;;  %v1030_v15 = vld [vmem:[%s1289_s4 + $0x20] sm:$0xff]   ;;  %v1016_v16 = vld [vmem:[%s1285_s0 + $0x10] sm:$0xff]   ;;  %v1164_v17 = vld [vmem:[%s1288_s3 + $0x8] sm:$0xff]  }
   0x7   :  { %878 = vmatpush3.bf16.msra.mxu0 %v1007_v1  ;;  %909 = vmatprep.subr.bf16.mxu1 %v1024_v8  ;;  %v1032_v18 = vld [vmem:[%s1289_s4 + $0x28] sm:$0xff]   ;;  %v1173_v19 = vld [vmem:[%s1288_s3 + $0x10] sm:$0xff]  }
   0x8   :  { %879 = vmatprep.subr.bf16.mxu0 %v1008_v2 }
   0xa   :  { %910 = vmatpush3.bf16.msra.mxu1 %v1024_v8 }
   0xb   :  { %880 = vmatpush3.bf16.msra.mxu0 %v1008_v2  ;;  %911 = vmatprep.subr.bf16.mxu1 %v1026_v10 }
   0xc   :  { %881 = vmatprep.subr.bf16.mxu0 %v1009_v3 }
   0xe   :  { %912 = vmatpush3.bf16.msra.mxu1 %v1026_v10 }
   0xf   :  { %882 = vmatpush3.bf16.msra.mxu0 %v1009_v3  ;;  %913 = vmatprep.subr.bf16.mxu1 %v1028_v12 }
  0x10   :  { %883 = vmatprep.subr.bf16.mxu0 %v1010_v5 }
  0x12   :  { %914 = vmatpush3.bf16.msra.mxu1 %v1028_v12 }
  0x13   :  { %884 = vmatpush3.bf16.msra.mxu0 %v1010_v5  ;;  %915 = vmatprep.subr.bf16.mxu1 %v1030_v15 }
  0x14   :  { %885 = vmatprep.subr.bf16.mxu0 %v1011_v6 }
  0x16   :  { %916 = vmatpush3.bf16.msra.mxu1 %v1030_v15 }
  0x17   :  { %886 = vmatpush3.bf16.msra.mxu0 %v1011_v6 }
  0x18   :  { %887 = vmatprep.subr.bf16.mxu0 %v1012_v9 }
  0x1b   :  { %888 = vmatpush3.bf16.msra.mxu0 %v1012_v9 }
  0x1c   :  { %889 = vmatprep.subr.bf16.mxu0 %v1013_v11 }
  0x1f   :  { %890 = vmatpush3.bf16.msra.mxu0 %v1013_v11 }
  0x20   :  { %939 = vmatprep.subr.bf16.mxu0 %v1150_v13 }
  0x22   :  { %892 = vmatmul.mubr.bf16.vlgmr.msra.gmra.mrb[0].mxu0 %v1015_v14 }
  0x23   :  { %895 = vmatprep.mubr.bf16.mxu0 %v1016_v16  ;;  %940 = vmatpush3.bf16.msra.mxu0 %v1150_v13 }
  0x24   :  { %941 = vmatprep.subr.bf16.mxu0 %v1164_v17 }
  0x25   :  { %11 = vsyncpa [#allocation4], 0  ;;  %917 = vmatprep.subr.bf16.mxu1 %v1032_v18  ;;  %v1034_v20 = vld [vmem:[%s1289_s4 + $0x30] sm:$0xff]   ;;  %v1017_v21 = vld [vmem:[%s1285_s0 + $0x18] sm:$0xff]  }
  0x26   :  { %v1018_v22 = vld [vmem:[%s1285_s0 + $0x20] sm:$0xff]   ;;  %v1191_v23 = vld [vmem:[%s1288_s3 + $0x18] sm:$0xff]   ;;  %918 = vmatpush3.bf16.msra.mxu1 %v1032_v18  ;;  %v1019_v25 = vld [vmem:[%s1285_s0 + $0x28] sm:$0xff]  }
  0x27   :  { %942 = vmatpush3.bf16.msra.mxu0 %v1164_v17  ;;  %919 = vmatprep.subr.bf16.mxu1 %v1034_v20  ;;  %v1198_v24 = vld [vmem:[%s1288_s3 + $0x20] sm:$0xff]   ;;  %v1020_v26 = vld [vmem:[%s1285_s0 + $0x30] sm:$0xff]   ;;  %v1211_v27 = vld [vmem:[%s1288_s3 + $0x28] sm:$0xff]  }
  0x28   :  { %943 = vmatprep.subr.bf16.mxu0 %v1173_v19  ;;  %v1218_v28 = vld [vmem:[%s1288_s3 + $0x30] sm:$0xff]   ;;  %v1021_v29 = vld [vmem:[%s1285_s0 + $0x38] sm:$0xff]   ;;  %v1038_v32 = vld [vmem:[%s1287_s2] sm:$0xff]  }
  0x29   :  { %v1036_v30 = vld [vmem:[%s1289_s4 + $0x38] sm:$0xff]   ;;  %v1039_v33 = vld [vmem:[%s1287_s2 + $0x8] sm:$0xff]   ;;  %v1040_v34 = vld [vmem:[%s1287_s2 + $0x10] sm:$0xff]  }
  0x2a   :  { %896 = vmatmul.mubr.bf16.gmra.mrb[4].mxu0 %v1017_v21  ;;  %920 = vmatpush3.bf16.msra.mxu1 %v1034_v20  ;;  %v1037_v31 = vld [vmem:[%s1288_s3 + $0x38] sm:$0xff]   ;;  %v1042_v60 = vld [vmem:[%s1287_s2 + $0x20] sm:$0xff]   ;;  %v1043_v61 = vld [vmem:[%s1287_s2 + $0x28] sm:$0xff]  }
  0x2b   :  { %899 = vmatprep.mubr.bf16.mxu0 %v1018_v22  ;;  %944 = vmatpush3.bf16.msra.mxu0 %v1173_v19  ;;  %v1041_v35 = vld [vmem:[%s1287_s2 + $0x18] sm:$0xff]   ;;  %v1044_v62 = vld [vmem:[%s1287_s2 + $0x30] sm:$0xff]   ;;  %v826_v9 = vld [vmem:[%s1290_s5] ss:$0 sm:$0xff] }
  0x2c   :  { %945 = vmatprep.subr.bf16.mxu0 %v1191_v23  ;;  %921 = vmatprep.subr.bf16.mxu1 %v1036_v30  ;;  %v1045_v63 = vld [vmem:[%s1287_s2 + $0x38] sm:$0xff]   ;;  %s1070_s2 = smov [#allocation3]  }
  0x2d   :  { %s775_s5 = sshll.u32 %s1070_s2, 4  ;;  %s776_s5 = int_to_ptr.vmem [resolvable:$true] %s775_s5 }
  0x2e   :  { %922 = vmatpush3.bf16.msra.mxu1 %v1036_v30  ;;  %s1046_s26 = scalar_lea.vmem %s776_s5, 2048  ;;  %p1051_p1 = scmp.lt.s32.totalorder %s776_s5, %s776_s5 }
  0x2f   :  { %946 = vmatpush3.bf16.msra.mxu0 %v1191_v23  ;;  %971 = vmatprep.subr.bf16.mxu1 %v1150_v13  ;;  %p1047_p0 = scmp.ne.s32.totalorder %s776_s5, %s1046_s26  ;;  %p1052_p2 = scmp.lt.s32.totalorder %s1046_s26, %s1046_s26 }
  0x30   :  { %947 = vmatprep.subr.bf16.mxu0 %v1198_v24 }
  0x31   :  { %p1053_p3 = por %p1052_p2, %p1051_p1 }
  0x32   :  { %900 = vmatmul.mubr.bf16.gmra.mrb[8].mxu0 %v1019_v25 }
  0x33   :  { %903 = vmatprep.mubr.bf16.mxu0 %v1020_v26  ;;  %948 = vmatpush3.bf16.msra.mxu0 %v1198_v24  ;;  %p1054_p4 = pnand %p1053_p3, %p1047_p0 }
  0x34   :  { %949 = vmatprep.subr.bf16.mxu0 %v1211_v27 }
  0x37   :  { %950 = vmatpush3.bf16.msra.mxu0 %v1211_v27 }
  0x38   :  { %951 = vmatprep.subr.bf16.mxu0 %v1218_v28 }
  0x3a   :  { %904 = vmatmul.mubr.bf16.gmra.mrb[12].mxu0 %v1021_v29 }
  0x3b   :  { %952 = vmatpush3.bf16.msra.mxu0 %v1218_v28  ;;  %955 = vmatprep.mubr.bf16.mxu0 %v1038_v32 }
  0x3c   :  { %953 = vmatprep.subr.bf16.mxu0 %v1037_v31 }
  0x3f   :  { %954 = vmatpush3.bf16.msra.mxu0 %v1037_v31 }
  0x42   :  { %956 = vmatmul.mubr.bf16.vlgmr.msra.gmra.mrb[16].mxu0 %v1039_v33 }
  0x43   :  { %959 = vmatprep.mubr.bf16.mxu0 %v1040_v34 }
  0x4a   :  { %960 = vmatmul.mubr.bf16.gmra.mrb[20].mxu0 %v1041_v35 }
  0xf5   :  { %v893_v36 = vpop.f32.mrb[0].mxu0 }
  0xf6   :  { %v223_v37 = vpop.f32.mrb[1].mxu0 }
  0xf7   :  { %v894_v38 = vpop.f32.mrb[2].mxu0 }
  0xf8   :  { %v370_v39 = vpack.c.bf16 %v894_v38, %v893_v36  ;;  %v226_v40 = vpop.f32.mrb[3].mxu0 }
  0xf9   :  { %v369_v41 = vpack.c.bf16 %v226_v40, %v223_v37 }
  0xfb   :  { %923 = vmatprep.mubr.bf16.mxu1 %v369_v41 }
  0xfc   :  { %924 = vmatmul.mubr.bf16.vlgmr.msra.gmra.mrb[0].mxu1 %v370_v39 }
  0xfd   :  { %979 = vmatpush3.bf16.msra.mxu1 %v1150_v13  ;;  %v897_v42 = vpop.f32.mrb[4].mxu0 }
  0xfe   :  { %v239_v43 = vpop.f32.mrb[5].mxu0  ;;  %972 = vmatprep.subr.bf16.mxu1 %v1164_v17 }
  0xff   :  { %v898_v44 = vpop.f32.mrb[6].mxu0 }
 0x100   :  { %v372_v45 = vpack.c.bf16 %v898_v44, %v897_v42  ;;  %v242_v46 = vpop.f32.mrb[7].mxu0 }
 0x101   :  { %v371_v47 = vpack.c.bf16 %v242_v46, %v239_v43  ;;  %980 = vmatpush3.bf16.msra.mxu1 %v1164_v17 }
 0x102   :  { %973 = vmatprep.subr.bf16.mxu1 %v1173_v19 }
 0x103   :  { %927 = vmatprep.mubr.bf16.mxu1 %v371_v47 }
 0x104   :  { %928 = vmatmul.mubr.bf16.gmra.mrb[4].mxu1 %v372_v45 }
 0x105   :  { %981 = vmatpush3.bf16.msra.mxu1 %v1173_v19  ;;  %v901_v48 = vpop.f32.mrb[8].mxu0 }
 0x106   :  { %v255_v49 = vpop.f32.mrb[9].mxu0  ;;  %974 = vmatprep.subr.bf16.mxu1 %v1191_v23 }
 0x107   :  { %v902_v50 = vpop.f32.mrb[10].mxu0 }
 0x108   :  { %v374_v51 = vpack.c.bf16 %v902_v50, %v901_v48  ;;  %v258_v52 = vpop.f32.mrb[11].mxu0 }
 0x109   :  { %v373_v53 = vpack.c.bf16 %v258_v52, %v255_v49  ;;  %982 = vmatpush3.bf16.msra.mxu1 %v1191_v23 }
 0x10a   :  { %975 = vmatprep.subr.bf16.mxu1 %v1198_v24 }
 0x10b   :  { %931 = vmatprep.mubr.bf16.mxu1 %v373_v53 }
 0x10c   :  { %932 = vmatmul.mubr.bf16.gmra.mrb[8].mxu1 %v374_v51 }
 0x10d   :  { %983 = vmatpush3.bf16.msra.mxu1 %v1198_v24  ;;  %v905_v54 = vpop.f32.mrb[12].mxu0 }
 0x10e   :  { %v271_v55 = vpop.f32.mrb[13].mxu0  ;;  %976 = vmatprep.subr.bf16.mxu1 %v1211_v27 }
 0x10f   :  { %v906_v56 = vpop.f32.mrb[14].mxu0 }
 0x110   :  { %v376_v57 = vpack.c.bf16 %v906_v56, %v905_v54  ;;  %v274_v58 = vpop.f32.mrb[15].mxu0 }
 0x111   :  { %v375_v59 = vpack.c.bf16 %v274_v58, %v271_v55  ;;  %984 = vmatpush3.bf16.msra.mxu1 %v1211_v27 }
 0x112   :  { %977 = vmatprep.subr.bf16.mxu1 %v1218_v28 }
 0x113   :  { %935 = vmatprep.mubr.bf16.mxu1 %v375_v59 }
 0x114   :  { %936 = vmatmul.mubr.bf16.gmra.mrb[12].mxu1 %v376_v57 }
 0x115   :  { %985 = vmatpush3.bf16.msra.mxu1 %v1218_v28  ;;  %963 = vmatprep.mubr.bf16.mxu1 %v1042_v60  ;;  %v957_v0 = vpop.f32.mrb[16].mxu0 }
 0x116   :  { %978 = vmatprep.subr.bf16.mxu1 %v1037_v31  ;;  %v668_v1 = vpop.f32.mrb[17].mxu0 }
 0x117   :  { %v958_v2 = vpop.f32.mrb[18].mxu0 }
 0x118   :  { %v671_v3 = vpop.f32.mrb[19].mxu0 }
 0x119   :  { %986 = vmatpush3.bf16.msra.mxu1 %v1037_v31 }
 0x11c   :  { %964 = vmatmul.mubr.bf16.vlgmr.msra.gmra.mrb[8].mxu1 %v1043_v61 }
 0x11d   :  { %967 = vmatprep.mubr.bf16.mxu1 %v1044_v62  ;;  %v961_v4 = vpop.f32.mrb[20].mxu0 }
 0x11e   :  { %v684_v5 = vpop.f32.mrb[21].mxu0 }
 0x11f   :  { %v962_v6 = vpop.f32.mrb[22].mxu0 }
 0x120   :  { %v687_v7 = vpop.f32.mrb[23].mxu0 }
 0x124   :  { %968 = vmatmul.mubr.bf16.gmra.mrb[12].mxu1 %v1045_v63 }
 0x1cf   :  { %v925_v8 = vpop.f32.mrb[0].mxu1 }
 0x1d0   :  { %v677_v10 = vadd.f32 %v957_v0, %v925_v8  ;;  %v475_v11 = vpop.f32.mrb[1].mxu1 }
 0x1d1   :  { %v669_v12 = vadd.f32 %v668_v1, %v475_v11  ;;  %v926_v13 = vpop.f32.mrb[2].mxu1 }
 0x1d2   :  { %v740_v14 = vadd.f32 %v826_v9, %v677_v10  ;;  %v680_v15 = vadd.f32 %v958_v2, %v926_v13  ;;  %v478_v16 = vpop.f32.mrb[3].mxu1 }
 0x1d3   :  { %v738_v17 = vadd.f32 %v826_v9, %v669_v12  ;;  %v672_v18 = vadd.f32 %v671_v3, %v478_v16 }
 0x1d4   :  { %756 = vst [vmem:[#allocation3 + $0x10] sm:$0xff] %v740_v14  ;;  %v741_v19 = vadd.f32 %v826_v9, %v680_v15 }
 0x1d5   :  { %754 = vst [vmem:[#allocation3] sm:$0xff] %v738_v17  ;;  %v739_v20 = vadd.f32 %v826_v9, %v672_v18 }
 0x1d6   :  { %757 = vst [vmem:[#allocation3 + $0x18] sm:$0xff] %v741_v19 }
 0x1d7   :  { %755 = vst [vmem:[#allocation3 + $0x8] sm:$0xff] %v739_v20  ;;  %v929_v21 = vpop.f32.mrb[4].mxu1 }
 0x1d8   :  { %v693_v22 = vadd.f32 %v961_v4, %v929_v21  ;;  %v491_v23 = vpop.f32.mrb[5].mxu1 }
 0x1d9   :  { %v685_v24 = vadd.f32 %v684_v5, %v491_v23  ;;  %v930_v25 = vpop.f32.mrb[6].mxu1 }
 0x1da   :  { %v744_v26 = vadd.f32 %v826_v9, %v693_v22  ;;  %v696_v27 = vadd.f32 %v962_v6, %v930_v25  ;;  %v494_v28 = vpop.f32.mrb[7].mxu1 }
 0x1db   :  { %v742_v29 = vadd.f32 %v826_v9, %v685_v24  ;;  %v688_v30 = vadd.f32 %v687_v7, %v494_v28 }
 0x1dc   :  { %760 = vst [vmem:[#allocation3 + $0x30] sm:$0xff] %v744_v26  ;;  %v745_v31 = vadd.f32 %v826_v9, %v696_v27 }
 0x1dd   :  { %758 = vst [vmem:[#allocation3 + $0x20] sm:$0xff] %v742_v29  ;;  %v743_v32 = vadd.f32 %v826_v9, %v688_v30 }
 0x1de   :  { %761 = vst [vmem:[#allocation3 + $0x38] sm:$0xff] %v745_v31 }
 0x1df   :  { %759 = vst [vmem:[#allocation3 + $0x28] sm:$0xff] %v743_v32 }
 0x1ef   :  { %v965_v33 = vpop.f32.mrb[8].mxu1 }
 0x1f0   :  { %v748_v34 = vadd.f32 %v965_v33, %v826_v9  ;;  %v700_v35 = vpop.f32.mrb[9].mxu1 }
 0x1f1   :  { %v746_v36 = vadd.f32 %v826_v9, %v700_v35  ;;  %v966_v37 = vpop.f32.mrb[10].mxu1 }
 0x1f2   :  { %764 = vst [vmem:[#allocation3 + $0x50] sm:$0xff] %v748_v34  ;;  %v749_v38 = vadd.f32 %v966_v37, %v826_v9  ;;  %v703_v39 = vpop.f32.mrb[11].mxu1 }
 0x1f3   :  { %762 = vst [vmem:[#allocation3 + $0x40] sm:$0xff] %v746_v36  ;;  %v747_v40 = vadd.f32 %v826_v9, %v703_v39 }
 0x1f4   :  { %765 = vst [vmem:[#allocation3 + $0x58] sm:$0xff] %v749_v38 }
 0x1f5   :  { %763 = vst [vmem:[#allocation3 + $0x48] sm:$0xff] %v747_v40 }
 0x1f7   :  { %v969_v41 = vpop.f32.mrb[12].mxu1 }
 0x1f8   :  { %v752_v42 = vadd.f32 %v969_v41, %v826_v9  ;;  %v716_v43 = vpop.f32.mrb[13].mxu1 }
 0x1f9   :  { %v750_v44 = vadd.f32 %v826_v9, %v716_v43  ;;  %v970_v45 = vpop.f32.mrb[14].mxu1 }
 0x1fa   :  { %768 = vst [vmem:[#allocation3 + $0x70] sm:$0xff] %v752_v42  ;;  %v753_v46 = vadd.f32 %v970_v45, %v826_v9  ;;  %v719_v47 = vpop.f32.mrb[15].mxu1 }
 0x1fb   :  { %766 = vst [vmem:[#allocation3 + $0x60] sm:$0xff] %v750_v44  ;;  %v751_v48 = vadd.f32 %v826_v9, %v719_v47 }
 0x1fc   :  { %769 = vst [vmem:[#allocation3 + $0x78] sm:$0xff] %v753_v46 }
 0x1fd   :  { %767 = vst [vmem:[#allocation3 + $0x68] sm:$0xff] %v751_v48 }
 0x1fe   :  { %1057 = shalt.err (!%p1054_p4)
}
 0x1ff   :  { %s1058_s28 = scalar_lea.hbm %s1291_s6, 2048 }
 0x200   :  { %p1059_p5 = scmp.ne.s32.totalorder %s1291_s6, %s1058_s28  ;;  %p1062_p6 = scmp.lt.u32.totalorder %s1058_s28, %s1291_s6 }
 0x202   :  { %p1064_p7 = pnand %p1062_p6, %p1059_p5 }
 0x204   :  { %1067 = shalt.err (!%p1064_p7)
}
 0x205   :  { %s1071_s9 = smov 128   ;;  %s1072_s10 = smov 8  }
 0x206   :  { %781 = dma.vmem_to_hbm [thread:$0]  %s776_s5, 2048, %s1291_s6, [#allocation4], %s1071_s9, %s1071_s9, %s1072_s10  }
 0x207   :  { %1068 = dma.done.wait [#allocation4], 2048  }
 0x208   :  { %1069 = vsyncadd [#allocation4], 4294965248 }
 0x209   :  { %785 = vsyncpa [#allocation4], 1 }

// kernel: model_forward.4
= control target key start
LH: loop header
LB: loop body
LE: loop exit
PB: predicated region body
PF: predicated region fallthrough
CT: control target
= control target key end

     0   :  { %s1437_s1 = inlined_call_operand.vmem [shape: bf16[128,128], index: 1, kind: input, shape index: {}, may-alias: {1,2}]   ;;  %s1438_s0 = inlined_call_operand.vmem [shape: bf16[128,128], index: 0, kind: input, shape index: {}]   ;;  %s1439_s4 = inlined_call_operand.vmem [shape: bf16[128,128], index: 4, kind: input, shape index: {}]   ;;  %s1440_s3 = inlined_call_operand.vmem [shape: bf16[128,128], index: 3, kind: input, shape index: {}]   ;;  %s1441_s2 = inlined_call_operand.vmem [shape: bf16[128,128], index: 2, kind: input, shape index: {}, may-alias: {1,2}]   ;;  %s1442_s5 = inlined_call_operand.vmem [shape: f32[1,128], index: 5, kind: input, shape index: {}]   ;;  %s1443_s6 = inlined_call_operand.vmem [shape: bf16[128,128], index: 6, kind: output, shape index: {}]  }
   0x1   :  { %v1149_v0 = vld [vmem:[%s1437_s1] sm:$0xff]   ;;  %v1150_v1 = vld [vmem:[%s1437_s1 + $0x8] sm:$0xff]   ;;  %v1151_v2 = vld [vmem:[%s1437_s1 + $0x10] sm:$0xff]  }
   0x2   :  { %1021 = vmatprep.subr.bf16.mxu0 %v1149_v0  ;;  %v1152_v3 = vld [vmem:[%s1437_s1 + $0x18] sm:$0xff]   ;;  %v1157_v4 = vld [vmem:[%s1438_s0] sm:$0xff]   ;;  %v1154_v6 = vld [vmem:[%s1437_s1 + $0x28] sm:$0xff]  }
   0x3   :  { %1022 = vmatpush3.bf16.msra.mxu0 %v1149_v0  ;;  %1037 = vmatprep.mubr.bf16.mxu0 %v1157_v4  ;;  %v1153_v5 = vld [vmem:[%s1437_s1 + $0x20] sm:$0xff]   ;;  %v1167_v8 = vld [vmem:[%s1439_s4 + $0x8] sm:$0xff]   ;;  %v1155_v9 = vld [vmem:[%s1437_s1 + $0x30] sm:$0xff]  }
   0x4   :  { %1023 = vmatprep.subr.bf16.mxu0 %v1150_v1  ;;  %v1165_v7 = vld [vmem:[%s1439_s4] sm:$0xff]   ;;  %v1169_v10 = vld [vmem:[%s1439_s4 + $0x10] sm:$0xff]   ;;  %v1156_v11 = vld [vmem:[%s1437_s1 + $0x38] sm:$0xff]  }
   0x5   :  { %1053 = vmatprep.subr.bf16.mxu1 %v1165_v7  ;;  %v1171_v12 = vld [vmem:[%s1439_s4 + $0x18] sm:$0xff]   ;;  %v1266_v13 = vld [vmem:[%s1440_s3] sm:$0xff]   ;;  %v1158_v15 = vld [vmem:[%s1438_s0 + $0x8] sm:$0xff]  }
   0x6   :  { %1054 = vmatpush3.bf16.msra.mxu1 %v1165_v7  ;;  %v1173_v14 = vld [vmem:[%s1439_s4 + $0x20] sm:$0xff]   ;;  %v1159_v16 = vld [vmem:[%s1438_s0 + $0x10] sm:$0xff]   ;;  %v1281_v17 = vld [vmem:[%s1440_s3 + $0x8] sm:$0xff]  }
   0x7   :  { %1024 = vmatpush3.bf16.msra.mxu0 %v1150_v1  ;;  %1055 = vmatprep.subr.bf16.mxu1 %v1167_v8  ;;  %v1175_v18 = vld [vmem:[%s1439_s4 + $0x28] sm:$0xff]   ;;  %v1291_v19 = vld [vmem:[%s1440_s3 + $0x10] sm:$0xff]   ;;  %v1160_v21 = vld [vmem:[%s1438_s0 + $0x18] sm:$0xff]  }
   0x8   :  { %1025 = vmatprep.subr.bf16.mxu0 %v1151_v2  ;;  %v1177_v20 = vld [vmem:[%s1439_s4 + $0x30] sm:$0xff]   ;;  %v1161_v22 = vld [vmem:[%s1438_s0 + $0x20] sm:$0xff]   ;;  %v1307_v23 = vld [vmem:[%s1440_s3 + $0x18] sm:$0xff]  }
   0x9   :  { %v1314_v24 = vld [vmem:[%s1440_s3 + $0x20] sm:$0xff]   ;;  %v1162_v25 = vld [vmem:[%s1438_s0 + $0x28] sm:$0xff]   ;;  %v1163_v26 = vld [vmem:[%s1438_s0 + $0x30] sm:$0xff]  }
   0xa   :  { %1056 = vmatpush3.bf16.msra.mxu1 %v1167_v8  ;;  %v1327_v27 = vld [vmem:[%s1440_s3 + $0x28] sm:$0xff]   ;;  %v1334_v28 = vld [vmem:[%s1440_s3 + $0x30] sm:$0xff]   ;;  %v1164_v29 = vld [vmem:[%s1438_s0 + $0x38] sm:$0xff]  }
   0xb   :  { %1026 = vmatpush3.bf16.msra.mxu0 %v1151_v2  ;;  %1057 = vmatprep.subr.bf16.mxu1 %v1169_v10  ;;  %v1179_v30 = vld [vmem:[%s1439_s4 + $0x38] sm:$0xff]   ;;  %v1181_v32 = vld [vmem:[%s1441_s2] sm:$0xff]   ;;  %v1182_v33 = vld [vmem:[%s1441_s2 + $0x8] sm:$0xff]  }
   0xc   :  { %1027 = vmatprep.subr.bf16.mxu0 %v1152_v3  ;;  %v1348_v31 = vld [vmem:[%s1440_s3 + $0x38] sm:$0xff]   ;;  %v1183_v34 = vld [vmem:[%s1441_s2 + $0x10] sm:$0xff]   ;;  %v1185_v60 = vld [vmem:[%s1441_s2 + $0x20] sm:$0xff]  }
   0xd   :  { %v1184_v35 = vld [vmem:[%s1441_s2 + $0x18] sm:$0xff]   ;;  %v1186_v61 = vld [vmem:[%s1441_s2 + $0x28] sm:$0xff]   ;;  %v1187_v62 = vld [vmem:[%s1441_s2 + $0x30] sm:$0xff]  }
   0xe   :  { %1058 = vmatpush3.bf16.msra.mxu1 %v1169_v10  ;;  %v1188_v63 = vld [vmem:[%s1441_s2 + $0x38] sm:$0xff]  }
   0xf   :  { %1028 = vmatpush3.bf16.msra.mxu0 %v1152_v3  ;;  %1059 = vmatprep.subr.bf16.mxu1 %v1171_v12 }
  0x10   :  { %1029 = vmatprep.subr.bf16.mxu0 %v1153_v5 }
  0x12   :  { %1060 = vmatpush3.bf16.msra.mxu1 %v1171_v12 }
  0x13   :  { %1030 = vmatpush3.bf16.msra.mxu0 %v1153_v5  ;;  %1061 = vmatprep.subr.bf16.mxu1 %v1173_v14 }
  0x14   :  { %1031 = vmatprep.subr.bf16.mxu0 %v1154_v6 }
  0x16   :  { %1062 = vmatpush3.bf16.msra.mxu1 %v1173_v14 }
  0x17   :  { %1032 = vmatpush3.bf16.msra.mxu0 %v1154_v6  ;;  %1063 = vmatprep.subr.bf16.mxu1 %v1175_v18 }
  0x18   :  { %1033 = vmatprep.subr.bf16.mxu0 %v1155_v9 }
  0x1a   :  { %1064 = vmatpush3.bf16.msra.mxu1 %v1175_v18 }
  0x1b   :  { %1034 = vmatpush3.bf16.msra.mxu0 %v1155_v9  ;;  %1065 = vmatprep.subr.bf16.mxu1 %v1177_v20  ;;  %v1395_v9 = vld [vmem:[%s1442_s5] ss:$0 sm:$0xff] }
  0x1c   :  { %1035 = vmatprep.subr.bf16.mxu0 %v1156_v11 }
  0x1e   :  { %1066 = vmatpush3.bf16.msra.mxu1 %v1177_v20 }
  0x1f   :  { %1036 = vmatpush3.bf16.msra.mxu0 %v1156_v11  ;;  %1067 = vmatprep.subr.bf16.mxu1 %v1179_v30 }
  0x20   :  { %1085 = vmatprep.subr.bf16.mxu0 %v1266_v13 }
  0x22   :  { %1038 = vmatmul.mubr.bf16.vlgmr.msra.gmra.mrb[0].mxu0 %v1158_v15  ;;  %1068 = vmatpush3.bf16.msra.mxu1 %v1179_v30 }
  0x23   :  { %1041 = vmatprep.mubr.bf16.mxu0 %v1159_v16  ;;  %1086 = vmatpush3.bf16.msra.mxu0 %v1266_v13 }
  0x24   :  { %1087 = vmatprep.subr.bf16.mxu0 %v1281_v17  ;;  %1117 = vmatprep.subr.bf16.mxu1 %v1266_v13 }
  0x27   :  { %1088 = vmatpush3.bf16.msra.mxu0 %v1281_v17 }
  0x28   :  { %1089 = vmatprep.subr.bf16.mxu0 %v1291_v19 }
  0x2a   :  { %1042 = vmatmul.mubr.bf16.gmra.mrb[4].mxu0 %v1160_v21 }
  0x2b   :  { %1045 = vmatprep.mubr.bf16.mxu0 %v1161_v22  ;;  %1090 = vmatpush3.bf16.msra.mxu0 %v1291_v19 }
  0x2c   :  { %1091 = vmatprep.subr.bf16.mxu0 %v1307_v23 }
  0x2f   :  { %1092 = vmatpush3.bf16.msra.mxu0 %v1307_v23 }
  0x30   :  { %1093 = vmatprep.subr.bf16.mxu0 %v1314_v24 }
  0x32   :  { %1046 = vmatmul.mubr.bf16.gmra.mrb[8].mxu0 %v1162_v25 }
  0x33   :  { %1049 = vmatprep.mubr.bf16.mxu0 %v1163_v26  ;;  %1094 = vmatpush3.bf16.msra.mxu0 %v1314_v24 }
  0x34   :  { %1095 = vmatprep.subr.bf16.mxu0 %v1327_v27 }
  0x37   :  { %1096 = vmatpush3.bf16.msra.mxu0 %v1327_v27 }
  0x38   :  { %1097 = vmatprep.subr.bf16.mxu0 %v1334_v28 }
  0x3a   :  { %1050 = vmatmul.mubr.bf16.gmra.mrb[12].mxu0 %v1164_v29 }
  0x3b   :  { %1098 = vmatpush3.bf16.msra.mxu0 %v1334_v28  ;;  %1101 = vmatprep.mubr.bf16.mxu0 %v1181_v32 }
  0x3c   :  { %1099 = vmatprep.subr.bf16.mxu0 %v1348_v31 }
  0x3f   :  { %1100 = vmatpush3.bf16.msra.mxu0 %v1348_v31 }
  0x42   :  { %1102 = vmatmul.mubr.bf16.vlgmr.msra.gmra.mrb[16].mxu0 %v1182_v33 }
  0x43   :  { %1105 = vmatprep.mubr.bf16.mxu0 %v1183_v34 }
  0x4a   :  { %1106 = vmatmul.mubr.bf16.gmra.mrb[20].mxu0 %v1184_v35 }
  0xf5   :  { %v1039_v36 = vpop.f32.mrb[0].mxu0 }
  0xf6   :  { %v222_v37 = vpop.f32.mrb[1].mxu0 }
  0xf7   :  { %v1040_v38 = vpop.f32.mrb[2].mxu0 }
  0xf8   :  { %v369_v39 = vpack.c.bf16 %v1040_v38, %v1039_v36  ;;  %v225_v40 = vpop.f32.mrb[3].mxu0 }
  0xf9   :  { %v368_v41 = vpack.c.bf16 %v225_v40, %v222_v37 }
  0xfb   :  { %1069 = vmatprep.mubr.bf16.mxu1 %v368_v41 }
  0xfc   :  { %1070 = vmatmul.mubr.bf16.vlgmr.msra.gmra.mrb[0].mxu1 %v369_v39 }
  0xfd   :  { %1125 = vmatpush3.bf16.msra.mxu1 %v1266_v13  ;;  %v1043_v42 = vpop.f32.mrb[4].mxu0 }
  0xfe   :  { %v238_v43 = vpop.f32.mrb[5].mxu0  ;;  %1118 = vmatprep.subr.bf16.mxu1 %v1281_v17 }
  0xff   :  { %v1044_v44 = vpop.f32.mrb[6].mxu0 }
 0x100   :  { %v371_v45 = vpack.c.bf16 %v1044_v44, %v1043_v42  ;;  %v241_v46 = vpop.f32.mrb[7].mxu0 }
 0x101   :  { %v370_v47 = vpack.c.bf16 %v241_v46, %v238_v43  ;;  %1126 = vmatpush3.bf16.msra.mxu1 %v1281_v17 }
 0x102   :  { %1119 = vmatprep.subr.bf16.mxu1 %v1291_v19 }
 0x103   :  { %1073 = vmatprep.mubr.bf16.mxu1 %v370_v47 }
 0x104   :  { %1074 = vmatmul.mubr.bf16.gmra.mrb[4].mxu1 %v371_v45 }
 0x105   :  { %1127 = vmatpush3.bf16.msra.mxu1 %v1291_v19  ;;  %v1047_v48 = vpop.f32.mrb[8].mxu0 }
 0x106   :  { %v254_v49 = vpop.f32.mrb[9].mxu0  ;;  %1120 = vmatprep.subr.bf16.mxu1 %v1307_v23 }
 0x107   :  { %v1048_v50 = vpop.f32.mrb[10].mxu0 }
 0x108   :  { %v373_v51 = vpack.c.bf16 %v1048_v50, %v1047_v48  ;;  %v257_v52 = vpop.f32.mrb[11].mxu0 }
 0x109   :  { %v372_v53 = vpack.c.bf16 %v257_v52, %v254_v49  ;;  %1128 = vmatpush3.bf16.msra.mxu1 %v1307_v23 }
 0x10a   :  { %1121 = vmatprep.subr.bf16.mxu1 %v1314_v24 }
 0x10b   :  { %1077 = vmatprep.mubr.bf16.mxu1 %v372_v53 }
 0x10c   :  { %1078 = vmatmul.mubr.bf16.gmra.mrb[8].mxu1 %v373_v51 }
 0x10d   :  { %1129 = vmatpush3.bf16.msra.mxu1 %v1314_v24  ;;  %v1051_v54 = vpop.f32.mrb[12].mxu0 }
 0x10e   :  { %v270_v55 = vpop.f32.mrb[13].mxu0  ;;  %1122 = vmatprep.subr.bf16.mxu1 %v1327_v27 }
 0x10f   :  { %v1052_v56 = vpop.f32.mrb[14].mxu0 }
 0x110   :  { %v375_v57 = vpack.c.bf16 %v1052_v56, %v1051_v54  ;;  %v273_v58 = vpop.f32.mrb[15].mxu0 }
 0x111   :  { %v374_v59 = vpack.c.bf16 %v273_v58, %v270_v55  ;;  %1130 = vmatpush3.bf16.msra.mxu1 %v1327_v27 }
 0x112   :  { %1123 = vmatprep.subr.bf16.mxu1 %v1334_v28 }
 0x113   :  { %1081 = vmatprep.mubr.bf16.mxu1 %v374_v59 }
 0x114   :  { %1082 = vmatmul.mubr.bf16.gmra.mrb[12].mxu1 %v375_v57 }
 0x115   :  { %1131 = vmatpush3.bf16.msra.mxu1 %v1334_v28  ;;  %1109 = vmatprep.mubr.bf16.mxu1 %v1185_v60  ;;  %v1103_v0 = vpop.f32.mrb[16].mxu0 }
 0x116   :  { %1124 = vmatprep.subr.bf16.mxu1 %v1348_v31  ;;  %v667_v1 = vpop.f32.mrb[17].mxu0 }
 0x117   :  { %v1104_v2 = vpop.f32.mrb[18].mxu0 }
 0x118   :  { %v670_v3 = vpop.f32.mrb[19].mxu0 }
 0x119   :  { %1132 = vmatpush3.bf16.msra.mxu1 %v1348_v31 }
 0x11c   :  { %1110 = vmatmul.mubr.bf16.vlgmr.msra.gmra.mrb[8].mxu1 %v1186_v61 }
 0x11d   :  { %1113 = vmatprep.mubr.bf16.mxu1 %v1187_v62  ;;  %v1107_v4 = vpop.f32.mrb[20].mxu0 }
 0x11e   :  { %v683_v5 = vpop.f32.mrb[21].mxu0 }
 0x11f   :  { %v1108_v6 = vpop.f32.mrb[22].mxu0 }
 0x120   :  { %v686_v7 = vpop.f32.mrb[23].mxu0 }
 0x124   :  { %1114 = vmatmul.mubr.bf16.gmra.mrb[12].mxu1 %v1188_v63 }
 0x1cf   :  { %v1071_v8 = vpop.f32.mrb[0].mxu1 }
 0x1d0   :  { %v676_v10 = vadd.f32 %v1103_v0, %v1071_v8  ;;  %v474_v11 = vpop.f32.mrb[1].mxu1 }
 0x1d1   :  { %v668_v12 = vadd.f32 %v667_v1, %v474_v11  ;;  %v1072_v13 = vpop.f32.mrb[2].mxu1 }
 0x1d2   :  { %v739_v14 = vadd.f32 %v1395_v9, %v676_v10  ;;  %v679_v15 = vadd.f32 %v1104_v2, %v1072_v13  ;;  %v477_v16 = vpop.f32.mrb[3].mxu1 }
 0x1d3   :  { %v737_v17 = vadd.f32 %v1395_v9, %v668_v12  ;;  %v671_v18 = vadd.f32 %v670_v3, %v477_v16 }
 0x1d4   :  { %v740_v19 = vadd.f32 %v1395_v9, %v679_v15  ;;  %v755_v21 = vmax.f32 %v739_v14, 0.0 }
 0x1d5   :  { %v738_v20 = vadd.f32 %v1395_v9, %v671_v18  ;;  %v753_v23 = vmax.f32 %v737_v17, 0.0 }
 0x1d6   :  { %v756_v22 = vmax.f32 %v740_v19, 0.0 }
 0x1d7   :  { %v754_v24 = vmax.f32 %v738_v20, 0.0  ;;  %v1075_v25 = vpop.f32.mrb[4].mxu1 }
 0x1d8   :  { %v934_v26 = vpack.c.bf16 %v756_v22, %v755_v21  ;;  %v692_v27 = vadd.f32 %v1107_v4, %v1075_v25  ;;  %v490_v28 = vpop.f32.mrb[5].mxu1 }
 0x1d9   :  { %v929_v29 = vpack.c.bf16 %v754_v24, %v753_v23  ;;  %v684_v30 = vadd.f32 %v683_v5, %v490_v28  ;;  %v1076_v31 = vpop.f32.mrb[6].mxu1 }
 0x1da   :  { %966 = vst [vmem:[%s1443_s6 + $0x8] sm:$0xff] %v934_v26   ;;  %v743_v32 = vadd.f32 %v1395_v9, %v692_v27  ;;  %v695_v33 = vadd.f32 %v1108_v6, %v1076_v31  ;;  %v493_v34 = vpop.f32.mrb[7].mxu1 }
 0x1db   :  { %930 = vst [vmem:[%s1443_s6] sm:$0xff] %v929_v29   ;;  %v741_v35 = vadd.f32 %v1395_v9, %v684_v30  ;;  %v687_v36 = vadd.f32 %v686_v7, %v493_v34 }
 0x1dc   :  { %v744_v37 = vadd.f32 %v1395_v9, %v695_v33  ;;  %v759_v39 = vmax.f32 %v743_v32, 0.0 }
 0x1dd   :  { %v742_v38 = vadd.f32 %v1395_v9, %v687_v36  ;;  %v757_v41 = vmax.f32 %v741_v35, 0.0 }
 0x1de   :  { %v760_v40 = vmax.f32 %v744_v37, 0.0 }
 0x1df   :  { %v758_v42 = vmax.f32 %v742_v38, 0.0 }
 0x1e0   :  { %v944_v43 = vpack.c.bf16 %v760_v40, %v759_v39 }
 0x1e1   :  { %v939_v44 = vpack.c.bf16 %v758_v42, %v757_v41 }
 0x1e2   :  { %968 = vst [vmem:[%s1443_s6 + $0x18] sm:$0xff] %v944_v43  }
 0x1e3   :  { %967 = vst [vmem:[%s1443_s6 + $0x10] sm:$0xff] %v939_v44  }
 0x1ef   :  { %v1111_v45 = vpop.f32.mrb[8].mxu1 }
 0x1f0   :  { %v747_v46 = vadd.f32 %v1111_v45, %v1395_v9  ;;  %v699_v47 = vpop.f32.mrb[9].mxu1 }
 0x1f1   :  { %v745_v48 = vadd.f32 %v1395_v9, %v699_v47  ;;  %v1112_v49 = vpop.f32.mrb[10].mxu1 }
 0x1f2   :  { %v748_v50 = vadd.f32 %v1112_v49, %v1395_v9  ;;  %v702_v51 = vpop.f32.mrb[11].mxu1  ;;  %v763_v53 = vmax.f32 %v747_v46, 0.0 }
 0x1f3   :  { %v746_v52 = vadd.f32 %v1395_v9, %v702_v51  ;;  %v761_v55 = vmax.f32 %v745_v48, 0.0 }
 0x1f4   :  { %v764_v54 = vmax.f32 %v748_v50, 0.0 }
 0x1f5   :  { %v762_v56 = vmax.f32 %v746_v52, 0.0 }
 0x1f6   :  { %v954_v57 = vpack.c.bf16 %v764_v54, %v763_v53 }
 0x1f7   :  { %v949_v58 = vpack.c.bf16 %v762_v56, %v761_v55  ;;  %v1115_v59 = vpop.f32.mrb[12].mxu1 }
 0x1f8   :  { %970 = vst [vmem:[%s1443_s6 + $0x28] sm:$0xff] %v954_v57   ;;  %v751_v60 = vadd.f32 %v1115_v59, %v1395_v9  ;;  %v715_v61 = vpop.f32.mrb[13].mxu1 }
 0x1f9   :  { %969 = vst [vmem:[%s1443_s6 + $0x20] sm:$0xff] %v949_v58   ;;  %v749_v62 = vadd.f32 %v1395_v9, %v715_v61  ;;  %v1116_v63 = vpop.f32.mrb[14].mxu1 }
 0x1fa   :  { %v752_v0 = vadd.f32 %v1116_v63, %v1395_v9  ;;  %v718_v1 = vpop.f32.mrb[15].mxu1  ;;  %v767_v3 = vmax.f32 %v751_v60, 0.0 }
 0x1fb   :  { %v750_v2 = vadd.f32 %v1395_v9, %v718_v1  ;;  %v765_v5 = vmax.f32 %v749_v62, 0.0 }
 0x1fc   :  { %v768_v4 = vmax.f32 %v752_v0, 0.0 }
 0x1fd   :  { %v766_v6 = vmax.f32 %v750_v2, 0.0 }
 0x1fe   :  { %v964_v7 = vpack.c.bf16 %v768_v4, %v767_v3 }
 0x1ff   :  { %v959_v8 = vpack.c.bf16 %v766_v6, %v765_v5 }
 0x200   :  { %972 = vst [vmem:[%s1443_s6 + $0x38] sm:$0xff] %v964_v7  }
 0x201   :  { %971 = vst [vmem:[%s1443_s6 + $0x30] sm:$0xff] %v959_v8  }

</bundles_post_ra>
